<compile_context>
chip_gen: v7x
topology: tpu7x:2x2x1
jax: 0.10.0
libtpu: 0.0.40
codegen_flags: <defaults>
</compile_context>

<pallas_src>
import math

import jax
import jax.numpy as jnp
from jax import lax
from jax.experimental import pallas as pl
from jax.experimental.pallas import tpu as pltpu


def _cdiv(a, b):
    return -(-a // b)


# ~600-cycle per-grid-step pipeline overhead expressed in units of one
# (chunk, 128) sub-tile of VPU work (~90-100 cycles).
_STEP_OVERHEAD_CHUNKS = 6


def _auto_compute_dtype():
    """bf16 VALU exists on v6e/v7x; v5e (and older) should stay in f32."""
    try:
        kind = jax.devices()[0].device_kind.lower()
    except Exception:  # no devices visible at trace time -> portable path
        return jnp.dtype(jnp.float32)
    if ("v6" in kind) or ("v7" in kind) or ("7x" in kind):
        return jnp.dtype(jnp.bfloat16)
    return jnp.dtype(jnp.float32)


def _choose_tiling(r_needed, chunk_rows, *, max_r_tile=256, min_tiles=2):
    """Pick (r_tile, n_tiles) for `r_needed` 128-wide rows of batch.

    Minimizes (padded work + per-step overhead) while preferring >= 2 grid
    steps (so v7x's two TensorCores both get a tile) and keeping the tile a
    multiple of `chunk_rows` (and <= max_r_tile, which is tiny vs VMEM anyway).
    """
    n_ch = _cdiv(r_needed, chunk_rows)          # work in chunk units
    max_ch = max(1, max_r_tile // chunk_rows)
    want_tiles = min(min_tiles, n_ch)
    best = None
    for ch in range(1, max_ch + 1):
        nt = _cdiv(n_ch, ch)
        padded = nt * ch
        cost = padded + _STEP_OVERHEAD_CHUNKS * nt
        key = (nt < want_tiles, cost, nt)
        if best is None or key < best[0]:
            best = (key, ch, nt)
    _, ch, nt = best
    return ch * chunk_rows, nt


def _make_mlp_kernel(r_tile, chunk_rows, compute_dtype, unroll=4):
    """Kernel body for one (r_tile, 128) batch tile.

    x_ref: (2, r_tile, 128) VMEM in `compute_dtype` (batch on sublanes/lanes)
    w*/b*: whole-array f32 SMEM operands (PyTorch (out, in) layout)
    o_ref: (r_tile, 128) VMEM f32 (lane-dense output block)
    """
    n_chunks = r_tile // chunk_rows
    cdt = compute_dtype

    def kernel(x_ref, w1_ref, b1_ref, w2_ref, b2_ref, w3_ref, b3_ref, o_ref):
        # ---- one-time prologue: hoist every SMEM scalar read (and its cast
        # to the compute dtype) out of the per-chunk loop.
        w1 = [[w1_ref[j, k].astype(cdt) for k in range(2)] for j in range(16)]
        b1 = [b1_ref[j].astype(cdt) for j in range(16)]
        w2 = [[w2_ref[j, k].astype(cdt) for k in range(16)] for j in range(8)]
        b2 = [b2_ref[j].astype(cdt) for j in range(8)]
        w3 = [w3_ref[0, k].astype(cdt) for k in range(8)]
        b3 = b3_ref[0].astype(cdt)

        def chunk(c, carry):
            r0 = pl.multiple_of(c * chunk_rows, chunk_rows)
            rows = pl.ds(r0, chunk_rows)
            x0 = x_ref[0, rows, :]              # (chunk_rows, 128) feature 0
            x1 = x_ref[1, rows, :]              # (chunk_rows, 128) feature 1

            # fc1: 16 outputs, K=2 (VPU broadcast-FMAs, batch on lanes)
            h1 = [jnp.maximum(w1[j][0] * x0 + w1[j][1] * x1 + b1[j], 0.0)
                  for j in range(16)]

            # fc2: 8 outputs, K=16 (dominant cost)
            h2 = []
            for j in range(8):
                a = b2[j] + w2[j][0] * h1[0]
                for k in range(1, 16):
                    a = a + w2[j][k] * h1[k]
                h2.append(jnp.maximum(a, 0.0))

            # fc3: 1 output, K=8
            z = b3 + w3[0] * h2[0]
            for k in range(1, 8):
                z = z + w3[k] * h2[k]

            # Sigmoid in f32: clamp so exp(-z) cannot overflow to inf, then
            # EUP exp + EUP approx reciprocal (no exact-divide VALU ops).
            z = jnp.maximum(z.astype(jnp.float32), -30.0)
            p = pl.reciprocal(1.0 + jnp.exp(-z), approx=True)
            o_ref[rows, :] = p.astype(o_ref.dtype)
            return carry

        lax.fori_loop(0, n_chunks, chunk, 0, unroll=min(unroll, n_chunks))

    return kernel


def _forward_impl(x, params, compute_dtype, out_dtype, max_r_tile):
    B = x.shape[0]
    is_bf16 = compute_dtype == jnp.dtype(jnp.bfloat16)
    # bf16 vregs are (16, 128): use 16-row chunks so packing is dense.
    chunk_rows = 16 if is_bf16 else 8

    r_needed = max(1, _cdiv(B, 128))
    r_tile, n_tiles = _choose_tiling(r_needed, chunk_rows, max_r_tile=max_r_tile)
    r_total = r_tile * n_tiles
    b_pad = r_total * 128

    # Batch onto lanes. Kept outside the kernel on purpose (see header note);
    # if the caller can already provide a feature-major (2, B) slab this
    # transpose/pad can be elided.
    xt = jnp.transpose(x.astype(compute_dtype))          # (2, B)
    if b_pad != B:
        xt = jnp.pad(xt, ((0, 0), (0, b_pad - B)))
    x3 = xt.reshape(2, r_total, 128)                      # (2, R, 128)

    smem = pl.BlockSpec(memory_space=pltpu.MemorySpace.SMEM)  # resident weights
    kernel = _make_mlp_kernel(r_tile, chunk_rows, compute_dtype)

    out = pl.pallas_call(
        kernel,
        out_shape=jax.ShapeDtypeStruct((r_total, 128), out_dtype),
        grid=(n_tiles,),
        in_specs=[
            pl.BlockSpec((2, r_tile, 128), lambda i: (0, i, 0)),  # x tile (pipelined)
            smem, smem, smem, smem, smem, smem,                   # w1,b1,w2,b2,w3,b3
        ],
        out_specs=pl.BlockSpec((r_tile, 128), lambda i: (i, 0)),  # lane-dense output
        compiler_params=pltpu.CompilerParams(
            dimension_semantics=("parallel",),   # batch tiles split across v7x's 2 TCs
        ),
    )(x3, params["w1"], params["b1"], params["w2"], params["b2"],
      params["w3"], params["b3"])

    return out.reshape(-1)[:B].reshape(B, 1)


def indoor_outdoor_forward(x, params, *, compute_dtype=None,
                           out_dtype=jnp.float32, max_r_tile=256):
    """Forward pass of IndoorOutdoorModel.

    x: (B, 2) float32; params: w1 (16,2), b1 (16,), w2 (8,16), b2 (8,),
    w3 (1,8), b3 (1,)  (PyTorch nn.Linear (out, in) layout).
    Returns (B, 1) probabilities in `out_dtype` (default f32 to match PyTorch;
    pass jnp.bfloat16 to halve store bytes if the consumer tolerates it).

    compute_dtype=None auto-selects bf16 on v6e/v7x (bf16 VALU) and f32
    elsewhere (v5e has no bf16 VALU/EUP).
    """
    auto = compute_dtype is None
    cdt = _auto_compute_dtype() if auto else jnp.dtype(compute_dtype)
    try:
        return _forward_impl(x, params, cdt, out_dtype, max_r_tile)
    except Exception:
        # Best-effort fast path only: if this jax/Mosaic build cannot lower the
        # auto-selected bf16 scalar-splat arithmetic, fall back to the portable
        # f32 VPU path (a strict superset of the bf16 path's accuracy).
        if (not auto) or cdt == jnp.dtype(jnp.float32):
            raise
        return _forward_impl(x, params, jnp.dtype(jnp.float32), out_dtype,
                             max_r_tile)


def init_params(key):
    """Deterministic init mirroring nn.Linear (weight (out, in), bias (out,))."""
    ks = jax.random.split(key, 6)

    def lin(kw, kb, fan_in, fan_out):
        bound = 1.0 / math.sqrt(fan_in)
        w = jax.random.uniform(kw, (fan_out, fan_in), jnp.float32, -bound, bound)
        b = jax.random.uniform(kb, (fan_out,), jnp.float32, -bound, bound)
        return w, b

    w1, b1 = lin(ks[0], ks[1], 2, 16)
    w2, b2 = lin(ks[2], ks[3], 16, 8)
    w3, b3 = lin(ks[4], ks[5], 8, 1)
    return dict(w1=w1, b1=b1, w2=w2, b2=b2, w3=w3, b3=b3)


def reference_forward(x, p):
    h1 = jnp.maximum(x @ p["w1"].T + p["b1"], 0.0)
    h2 = jnp.maximum(h1 @ p["w2"].T + p["b2"], 0.0)
    return jax.nn.sigmoid(h2 @ p["w3"].T + p["b3"])


if __name__ == "__main__":
    key = jax.random.PRNGKey(0)
    k_param, k_x = jax.random.split(key)
    params = init_params(k_param)

    # Tolerance: the bf16 fast path (v6e/v7x) accumulates fc2 in bf16 and the
    # sigmoid uses an approx EUP reciprocal -> looser bound than pure f32.
    auto_bf16 = _auto_compute_dtype() == jnp.dtype(jnp.bfloat16)
    tol = 2e-2 if auto_bf16 else 5e-3

    # Small ragged batch (padding path) + a batch that exercises >= 2 grid
    # steps and a multi-chunk fori_loop.
    for B in (300, 2500):
        x = jax.random.normal(jax.random.fold_in(k_x, B), (B, 2), jnp.float32)
        out = jax.block_until_ready(indoor_outdoor_forward(x, params))
        ref = reference_forward(x, params)
        assert out.shape == (B, 1), f"B={B}: bad shape {out.shape}"
        max_err = float(jnp.max(jnp.abs(out.astype(jnp.float32) - ref)))
        assert max_err < tol, f"B={B}: max abs error {max_err}"

    print("KERNEL_OK")
</pallas_src>

<mosaic_0001>
module attributes {stable_mosaic.version = 11 : i64} {
  func.func @kernel(%arg0: i32, %arg1: memref<2x8x128xf32, #tpu.memory_space<vmem>>, %arg2: memref<16x2xf32, #tpu.memory_space<smem>>, %arg3: memref<16xf32, #tpu.memory_space<smem>>, %arg4: memref<8x16xf32, #tpu.memory_space<smem>>, %arg5: memref<8xf32, #tpu.memory_space<smem>>, %arg6: memref<1x8xf32, #tpu.memory_space<smem>>, %arg7: memref<1xf32, #tpu.memory_space<smem>>, %arg8: memref<8x128xf32, #tpu.memory_space<vmem>>) attributes {dimension_semantics = [#tpu.dimension_semantics<parallel>], iteration_bounds = array<i64: 1>, scalar_prefetch = 0 : i64, scratch_operands = 0 : i64, tpu.core_type = #tpu.core_type<tc>, window_params = [{transform_indices = @transform_0, window_bounds = array<i64: 2, 8, 128>}, {transform_indices = @transform_1, window_bounds = array<i64: 16, 2>}, {transform_indices = @transform_2, window_bounds = array<i64: 16>}, {transform_indices = @transform_3, window_bounds = array<i64: 8, 16>}, {transform_indices = @transform_4, window_bounds = array<i64: 8>}, {transform_indices = @transform_5, window_bounds = array<i64: 1, 8>}, {transform_indices = @transform_6, window_bounds = array<i64: 1>}, {transform_indices = @transform_7, window_bounds = array<i64: 8, 128>}]} {
    %c0 = arith.constant 0 : index
    %c0_0 = arith.constant 0 : index
    %0 = memref.load %arg2[%c0, %c0_0] : memref<16x2xf32, #tpu.memory_space<smem>>
    %c0_1 = arith.constant 0 : index
    %c1 = arith.constant 1 : index
    %1 = memref.load %arg2[%c0_1, %c1] : memref<16x2xf32, #tpu.memory_space<smem>>
    %c1_2 = arith.constant 1 : index
    %c0_3 = arith.constant 0 : index
    %2 = memref.load %arg2[%c1_2, %c0_3] : memref<16x2xf32, #tpu.memory_space<smem>>
    %c1_4 = arith.constant 1 : index
    %c1_5 = arith.constant 1 : index
    %3 = memref.load %arg2[%c1_4, %c1_5] : memref<16x2xf32, #tpu.memory_space<smem>>
    %c2 = arith.constant 2 : index
    %c0_6 = arith.constant 0 : index
    %4 = memref.load %arg2[%c2, %c0_6] : memref<16x2xf32, #tpu.memory_space<smem>>
    %c2_7 = arith.constant 2 : index
    %c1_8 = arith.constant 1 : index
    %5 = memref.load %arg2[%c2_7, %c1_8] : memref<16x2xf32, #tpu.memory_space<smem>>
    %c3 = arith.constant 3 : index
    %c0_9 = arith.constant 0 : index
    %6 = memref.load %arg2[%c3, %c0_9] : memref<16x2xf32, #tpu.memory_space<smem>>
    %c3_10 = arith.constant 3 : index
    %c1_11 = arith.constant 1 : index
    %7 = memref.load %arg2[%c3_10, %c1_11] : memref<16x2xf32, #tpu.memory_space<smem>>
    %c4 = arith.constant 4 : index
    %c0_12 = arith.constant 0 : index
    %8 = memref.load %arg2[%c4, %c0_12] : memref<16x2xf32, #tpu.memory_space<smem>>
    %c4_13 = arith.constant 4 : index
    %c1_14 = arith.constant 1 : index
    %9 = memref.load %arg2[%c4_13, %c1_14] : memref<16x2xf32, #tpu.memory_space<smem>>
    %c5 = arith.constant 5 : index
    %c0_15 = arith.constant 0 : index
    %10 = memref.load %arg2[%c5, %c0_15] : memref<16x2xf32, #tpu.memory_space<smem>>
    %c5_16 = arith.constant 5 : index
    %c1_17 = arith.constant 1 : index
    %11 = memref.load %arg2[%c5_16, %c1_17] : memref<16x2xf32, #tpu.memory_space<smem>>
    %c6 = arith.constant 6 : index
    %c0_18 = arith.constant 0 : index
    %12 = memref.load %arg2[%c6, %c0_18] : memref<16x2xf32, #tpu.memory_space<smem>>
    %c6_19 = arith.constant 6 : index
    %c1_20 = arith.constant 1 : index
    %13 = memref.load %arg2[%c6_19, %c1_20] : memref<16x2xf32, #tpu.memory_space<smem>>
    %c7 = arith.constant 7 : index
    %c0_21 = arith.constant 0 : index
    %14 = memref.load %arg2[%c7, %c0_21] : memref<16x2xf32, #tpu.memory_space<smem>>
    %c7_22 = arith.constant 7 : index
    %c1_23 = arith.constant 1 : index
    %15 = memref.load %arg2[%c7_22, %c1_23] : memref<16x2xf32, #tpu.memory_space<smem>>
    %c8 = arith.constant 8 : index
    %c0_24 = arith.constant 0 : index
    %16 = memref.load %arg2[%c8, %c0_24] : memref<16x2xf32, #tpu.memory_space<smem>>
    %c8_25 = arith.constant 8 : index
    %c1_26 = arith.constant 1 : index
    %17 = memref.load %arg2[%c8_25, %c1_26] : memref<16x2xf32, #tpu.memory_space<smem>>
    %c9 = arith.constant 9 : index
    %c0_27 = arith.constant 0 : index
    %18 = memref.load %arg2[%c9, %c0_27] : memref<16x2xf32, #tpu.memory_space<smem>>
    %c9_28 = arith.constant 9 : index
    %c1_29 = arith.constant 1 : index
    %19 = memref.load %arg2[%c9_28, %c1_29] : memref<16x2xf32, #tpu.memory_space<smem>>
    %c10 = arith.constant 10 : index
    %c0_30 = arith.constant 0 : index
    %20 = memref.load %arg2[%c10, %c0_30] : memref<16x2xf32, #tpu.memory_space<smem>>
    %c10_31 = arith.constant 10 : index
    %c1_32 = arith.constant 1 : index
    %21 = memref.load %arg2[%c10_31, %c1_32] : memref<16x2xf32, #tpu.memory_space<smem>>
    %c11 = arith.constant 11 : index
    %c0_33 = arith.constant 0 : index
    %22 = memref.load %arg2[%c11, %c0_33] : memref<16x2xf32, #tpu.memory_space<smem>>
    %c11_34 = arith.constant 11 : index
    %c1_35 = arith.constant 1 : index
    %23 = memref.load %arg2[%c11_34, %c1_35] : memref<16x2xf32, #tpu.memory_space<smem>>
    %c12 = arith.constant 12 : index
    %c0_36 = arith.constant 0 : index
    %24 = memref.load %arg2[%c12, %c0_36] : memref<16x2xf32, #tpu.memory_space<smem>>
    %c12_37 = arith.constant 12 : index
    %c1_38 = arith.constant 1 : index
    %25 = memref.load %arg2[%c12_37, %c1_38] : memref<16x2xf32, #tpu.memory_space<smem>>
    %c13 = arith.constant 13 : index
    %c0_39 = arith.constant 0 : index
    %26 = memref.load %arg2[%c13, %c0_39] : memref<16x2xf32, #tpu.memory_space<smem>>
    %c13_40 = arith.constant 13 : index
    %c1_41 = arith.constant 1 : index
    %27 = memref.load %arg2[%c13_40, %c1_41] : memref<16x2xf32, #tpu.memory_space<smem>>
    %c14 = arith.constant 14 : index
    %c0_42 = arith.constant 0 : index
    %28 = memref.load %arg2[%c14, %c0_42] : memref<16x2xf32, #tpu.memory_space<smem>>
    %c14_43 = arith.constant 14 : index
    %c1_44 = arith.constant 1 : index
    %29 = memref.load %arg2[%c14_43, %c1_44] : memref<16x2xf32, #tpu.memory_space<smem>>
    %c15 = arith.constant 15 : index
    %c0_45 = arith.constant 0 : index
    %30 = memref.load %arg2[%c15, %c0_45] : memref<16x2xf32, #tpu.memory_space<smem>>
    %c15_46 = arith.constant 15 : index
    %c1_47 = arith.constant 1 : index
    %31 = memref.load %arg2[%c15_46, %c1_47] : memref<16x2xf32, #tpu.memory_space<smem>>
    %c0_48 = arith.constant 0 : index
    %32 = memref.load %arg3[%c0_48] : memref<16xf32, #tpu.memory_space<smem>>
    %c1_49 = arith.constant 1 : index
    %33 = memref.load %arg3[%c1_49] : memref<16xf32, #tpu.memory_space<smem>>
    %c2_50 = arith.constant 2 : index
    %34 = memref.load %arg3[%c2_50] : memref<16xf32, #tpu.memory_space<smem>>
    %c3_51 = arith.constant 3 : index
    %35 = memref.load %arg3[%c3_51] : memref<16xf32, #tpu.memory_space<smem>>
    %c4_52 = arith.constant 4 : index
    %36 = memref.load %arg3[%c4_52] : memref<16xf32, #tpu.memory_space<smem>>
    %c5_53 = arith.constant 5 : index
    %37 = memref.load %arg3[%c5_53] : memref<16xf32, #tpu.memory_space<smem>>
    %c6_54 = arith.constant 6 : index
    %38 = memref.load %arg3[%c6_54] : memref<16xf32, #tpu.memory_space<smem>>
    %c7_55 = arith.constant 7 : index
    %39 = memref.load %arg3[%c7_55] : memref<16xf32, #tpu.memory_space<smem>>
    %c8_56 = arith.constant 8 : index
    %40 = memref.load %arg3[%c8_56] : memref<16xf32, #tpu.memory_space<smem>>
    %c9_57 = arith.constant 9 : index
    %41 = memref.load %arg3[%c9_57] : memref<16xf32, #tpu.memory_space<smem>>
    %c10_58 = arith.constant 10 : index
    %42 = memref.load %arg3[%c10_58] : memref<16xf32, #tpu.memory_space<smem>>
    %c11_59 = arith.constant 11 : index
    %43 = memref.load %arg3[%c11_59] : memref<16xf32, #tpu.memory_space<smem>>
    %c12_60 = arith.constant 12 : index
    %44 = memref.load %arg3[%c12_60] : memref<16xf32, #tpu.memory_space<smem>>
    %c13_61 = arith.constant 13 : index
    %45 = memref.load %arg3[%c13_61] : memref<16xf32, #tpu.memory_space<smem>>
    %c14_62 = arith.constant 14 : index
    %46 = memref.load %arg3[%c14_62] : memref<16xf32, #tpu.memory_space<smem>>
    %c15_63 = arith.constant 15 : index
    %47 = memref.load %arg3[%c15_63] : memref<16xf32, #tpu.memory_space<smem>>
    %c0_64 = arith.constant 0 : index
    %c0_65 = arith.constant 0 : index
    %48 = memref.load %arg4[%c0_64, %c0_65] : memref<8x16xf32, #tpu.memory_space<smem>>
    %c0_66 = arith.constant 0 : index
    %c1_67 = arith.constant 1 : index
    %49 = memref.load %arg4[%c0_66, %c1_67] : memref<8x16xf32, #tpu.memory_space<smem>>
    %c0_68 = arith.constant 0 : index
    %c2_69 = arith.constant 2 : index
    %50 = memref.load %arg4[%c0_68, %c2_69] : memref<8x16xf32, #tpu.memory_space<smem>>
    %c0_70 = arith.constant 0 : index
    %c3_71 = arith.constant 3 : index
    %51 = memref.load %arg4[%c0_70, %c3_71] : memref<8x16xf32, #tpu.memory_space<smem>>
    %c0_72 = arith.constant 0 : index
    %c4_73 = arith.constant 4 : index
    %52 = memref.load %arg4[%c0_72, %c4_73] : memref<8x16xf32, #tpu.memory_space<smem>>
    %c0_74 = arith.constant 0 : index
    %c5_75 = arith.constant 5 : index
    %53 = memref.load %arg4[%c0_74, %c5_75] : memref<8x16xf32, #tpu.memory_space<smem>>
    %c0_76 = arith.constant 0 : index
    %c6_77 = arith.constant 6 : index
    %54 = memref.load %arg4[%c0_76, %c6_77] : memref<8x16xf32, #tpu.memory_space<smem>>
    %c0_78 = arith.constant 0 : index
    %c7_79 = arith.constant 7 : index
    %55 = memref.load %arg4[%c0_78, %c7_79] : memref<8x16xf32, #tpu.memory_space<smem>>
    %c0_80 = arith.constant 0 : index
    %c8_81 = arith.constant 8 : index
    %56 = memref.load %arg4[%c0_80, %c8_81] : memref<8x16xf32, #tpu.memory_space<smem>>
    %c0_82 = arith.constant 0 : index
    %c9_83 = arith.constant 9 : index
    %57 = memref.load %arg4[%c0_82, %c9_83] : memref<8x16xf32, #tpu.memory_space<smem>>
    %c0_84 = arith.constant 0 : index
    %c10_85 = arith.constant 10 : index
    %58 = memref.load %arg4[%c0_84, %c10_85] : memref<8x16xf32, #tpu.memory_space<smem>>
    %c0_86 = arith.constant 0 : index
    %c11_87 = arith.constant 11 : index
    %59 = memref.load %arg4[%c0_86, %c11_87] : memref<8x16xf32, #tpu.memory_space<smem>>
    %c0_88 = arith.constant 0 : index
    %c12_89 = arith.constant 12 : index
    %60 = memref.load %arg4[%c0_88, %c12_89] : memref<8x16xf32, #tpu.memory_space<smem>>
    %c0_90 = arith.constant 0 : index
    %c13_91 = arith.constant 13 : index
    %61 = memref.load %arg4[%c0_90, %c13_91] : memref<8x16xf32, #tpu.memory_space<smem>>
    %c0_92 = arith.constant 0 : index
    %c14_93 = arith.constant 14 : index
    %62 = memref.load %arg4[%c0_92, %c14_93] : memref<8x16xf32, #tpu.memory_space<smem>>
    %c0_94 = arith.constant 0 : index
    %c15_95 = arith.constant 15 : index
    %63 = memref.load %arg4[%c0_94, %c15_95] : memref<8x16xf32, #tpu.memory_space<smem>>
    %c1_96 = arith.constant 1 : index
    %c0_97 = arith.constant 0 : index
    %64 = memref.load %arg4[%c1_96, %c0_97] : memref<8x16xf32, #tpu.memory_space<smem>>
    %c1_98 = arith.constant 1 : index
    %c1_99 = arith.constant 1 : index
    %65 = memref.load %arg4[%c1_98, %c1_99] : memref<8x16xf32, #tpu.memory_space<smem>>
    %c1_100 = arith.constant 1 : index
    %c2_101 = arith.constant 2 : index
    %66 = memref.load %arg4[%c1_100, %c2_101] : memref<8x16xf32, #tpu.memory_space<smem>>
    %c1_102 = arith.constant 1 : index
    %c3_103 = arith.constant 3 : index
    %67 = memref.load %arg4[%c1_102, %c3_103] : memref<8x16xf32, #tpu.memory_space<smem>>
    %c1_104 = arith.constant 1 : index
    %c4_105 = arith.constant 4 : index
    %68 = memref.load %arg4[%c1_104, %c4_105] : memref<8x16xf32, #tpu.memory_space<smem>>
    %c1_106 = arith.constant 1 : index
    %c5_107 = arith.constant 5 : index
    %69 = memref.load %arg4[%c1_106, %c5_107] : memref<8x16xf32, #tpu.memory_space<smem>>
    %c1_108 = arith.constant 1 : index
    %c6_109 = arith.constant 6 : index
    %70 = memref.load %arg4[%c1_108, %c6_109] : memref<8x16xf32, #tpu.memory_space<smem>>
    %c1_110 = arith.constant 1 : index
    %c7_111 = arith.constant 7 : index
    %71 = memref.load %arg4[%c1_110, %c7_111] : memref<8x16xf32, #tpu.memory_space<smem>>
    %c1_112 = arith.constant 1 : index
    %c8_113 = arith.constant 8 : index
    %72 = memref.load %arg4[%c1_112, %c8_113] : memref<8x16xf32, #tpu.memory_space<smem>>
    %c1_114 = arith.constant 1 : index
    %c9_115 = arith.constant 9 : index
    %73 = memref.load %arg4[%c1_114, %c9_115] : memref<8x16xf32, #tpu.memory_space<smem>>
    %c1_116 = arith.constant 1 : index
    %c10_117 = arith.constant 10 : index
    %74 = memref.load %arg4[%c1_116, %c10_117] : memref<8x16xf32, #tpu.memory_space<smem>>
    %c1_118 = arith.constant 1 : index
    %c11_119 = arith.constant 11 : index
    %75 = memref.load %arg4[%c1_118, %c11_119] : memref<8x16xf32, #tpu.memory_space<smem>>
    %c1_120 = arith.constant 1 : index
    %c12_121 = arith.constant 12 : index
    %76 = memref.load %arg4[%c1_120, %c12_121] : memref<8x16xf32, #tpu.memory_space<smem>>
    %c1_122 = arith.constant 1 : index
    %c13_123 = arith.constant 13 : index
    %77 = memref.load %arg4[%c1_122, %c13_123] : memref<8x16xf32, #tpu.memory_space<smem>>
    %c1_124 = arith.constant 1 : index
    %c14_125 = arith.constant 14 : index
    %78 = memref.load %arg4[%c1_124, %c14_125] : memref<8x16xf32, #tpu.memory_space<smem>>
    %c1_126 = arith.constant 1 : index
    %c15_127 = arith.constant 15 : index
    %79 = memref.load %arg4[%c1_126, %c15_127] : memref<8x16xf32, #tpu.memory_space<smem>>
    %c2_128 = arith.constant 2 : index
    %c0_129 = arith.constant 0 : index
    %80 = memref.load %arg4[%c2_128, %c0_129] : memref<8x16xf32, #tpu.memory_space<smem>>
    %c2_130 = arith.constant 2 : index
    %c1_131 = arith.constant 1 : index
    %81 = memref.load %arg4[%c2_130, %c1_131] : memref<8x16xf32, #tpu.memory_space<smem>>
    %c2_132 = arith.constant 2 : index
    %c2_133 = arith.constant 2 : index
    %82 = memref.load %arg4[%c2_132, %c2_133] : memref<8x16xf32, #tpu.memory_space<smem>>
    %c2_134 = arith.constant 2 : index
    %c3_135 = arith.constant 3 : index
    %83 = memref.load %arg4[%c2_134, %c3_135] : memref<8x16xf32, #tpu.memory_space<smem>>
    %c2_136 = arith.constant 2 : index
    %c4_137 = arith.constant 4 : index
    %84 = memref.load %arg4[%c2_136, %c4_137] : memref<8x16xf32, #tpu.memory_space<smem>>
    %c2_138 = arith.constant 2 : index
    %c5_139 = arith.constant 5 : index
    %85 = memref.load %arg4[%c2_138, %c5_139] : memref<8x16xf32, #tpu.memory_space<smem>>
    %c2_140 = arith.constant 2 : index
    %c6_141 = arith.constant 6 : index
    %86 = memref.load %arg4[%c2_140, %c6_141] : memref<8x16xf32, #tpu.memory_space<smem>>
    %c2_142 = arith.constant 2 : index
    %c7_143 = arith.constant 7 : index
    %87 = memref.load %arg4[%c2_142, %c7_143] : memref<8x16xf32, #tpu.memory_space<smem>>
    %c2_144 = arith.constant 2 : index
    %c8_145 = arith.constant 8 : index
    %88 = memref.load %arg4[%c2_144, %c8_145] : memref<8x16xf32, #tpu.memory_space<smem>>
    %c2_146 = arith.constant 2 : index
    %c9_147 = arith.constant 9 : index
    %89 = memref.load %arg4[%c2_146, %c9_147] : memref<8x16xf32, #tpu.memory_space<smem>>
    %c2_148 = arith.constant 2 : index
    %c10_149 = arith.constant 10 : index
    %90 = memref.load %arg4[%c2_148, %c10_149] : memref<8x16xf32, #tpu.memory_space<smem>>
    %c2_150 = arith.constant 2 : index
    %c11_151 = arith.constant 11 : index
    %91 = memref.load %arg4[%c2_150, %c11_151] : memref<8x16xf32, #tpu.memory_space<smem>>
    %c2_152 = arith.constant 2 : index
    %c12_153 = arith.constant 12 : index
    %92 = memref.load %arg4[%c2_152, %c12_153] : memref<8x16xf32, #tpu.memory_space<smem>>
    %c2_154 = arith.constant 2 : index
    %c13_155 = arith.constant 13 : index
    %93 = memref.load %arg4[%c2_154, %c13_155] : memref<8x16xf32, #tpu.memory_space<smem>>
    %c2_156 = arith.constant 2 : index
    %c14_157 = arith.constant 14 : index
    %94 = memref.load %arg4[%c2_156, %c14_157] : memref<8x16xf32, #tpu.memory_space<smem>>
    %c2_158 = arith.constant 2 : index
    %c15_159 = arith.constant 15 : index
    %95 = memref.load %arg4[%c2_158, %c15_159] : memref<8x16xf32, #tpu.memory_space<smem>>
    %c3_160 = arith.constant 3 : index
    %c0_161 = arith.constant 0 : index
    %96 = memref.load %arg4[%c3_160, %c0_161] : memref<8x16xf32, #tpu.memory_space<smem>>
    %c3_162 = arith.constant 3 : index
    %c1_163 = arith.constant 1 : index
    %97 = memref.load %arg4[%c3_162, %c1_163] : memref<8x16xf32, #tpu.memory_space<smem>>
    %c3_164 = arith.constant 3 : index
    %c2_165 = arith.constant 2 : index
    %98 = memref.load %arg4[%c3_164, %c2_165] : memref<8x16xf32, #tpu.memory_space<smem>>
    %c3_166 = arith.constant 3 : index
    %c3_167 = arith.constant 3 : index
    %99 = memref.load %arg4[%c3_166, %c3_167] : memref<8x16xf32, #tpu.memory_space<smem>>
    %c3_168 = arith.constant 3 : index
    %c4_169 = arith.constant 4 : index
    %100 = memref.load %arg4[%c3_168, %c4_169] : memref<8x16xf32, #tpu.memory_space<smem>>
    %c3_170 = arith.constant 3 : index
    %c5_171 = arith.constant 5 : index
    %101 = memref.load %arg4[%c3_170, %c5_171] : memref<8x16xf32, #tpu.memory_space<smem>>
    %c3_172 = arith.constant 3 : index
    %c6_173 = arith.constant 6 : index
    %102 = memref.load %arg4[%c3_172, %c6_173] : memref<8x16xf32, #tpu.memory_space<smem>>
    %c3_174 = arith.constant 3 : index
    %c7_175 = arith.constant 7 : index
    %103 = memref.load %arg4[%c3_174, %c7_175] : memref<8x16xf32, #tpu.memory_space<smem>>
    %c3_176 = arith.constant 3 : index
    %c8_177 = arith.constant 8 : index
    %104 = memref.load %arg4[%c3_176, %c8_177] : memref<8x16xf32, #tpu.memory_space<smem>>
    %c3_178 = arith.constant 3 : index
    %c9_179 = arith.constant 9 : index
    %105 = memref.load %arg4[%c3_178, %c9_179] : memref<8x16xf32, #tpu.memory_space<smem>>
    %c3_180 = arith.constant 3 : index
    %c10_181 = arith.constant 10 : index
    %106 = memref.load %arg4[%c3_180, %c10_181] : memref<8x16xf32, #tpu.memory_space<smem>>
    %c3_182 = arith.constant 3 : index
    %c11_183 = arith.constant 11 : index
    %107 = memref.load %arg4[%c3_182, %c11_183] : memref<8x16xf32, #tpu.memory_space<smem>>
    %c3_184 = arith.constant 3 : index
    %c12_185 = arith.constant 12 : index
    %108 = memref.load %arg4[%c3_184, %c12_185] : memref<8x16xf32, #tpu.memory_space<smem>>
    %c3_186 = arith.constant 3 : index
    %c13_187 = arith.constant 13 : index
    %109 = memref.load %arg4[%c3_186, %c13_187] : memref<8x16xf32, #tpu.memory_space<smem>>
    %c3_188 = arith.constant 3 : index
    %c14_189 = arith.constant 14 : index
    %110 = memref.load %arg4[%c3_188, %c14_189] : memref<8x16xf32, #tpu.memory_space<smem>>
    %c3_190 = arith.constant 3 : index
    %c15_191 = arith.constant 15 : index
    %111 = memref.load %arg4[%c3_190, %c15_191] : memref<8x16xf32, #tpu.memory_space<smem>>
    %c4_192 = arith.constant 4 : index
    %c0_193 = arith.constant 0 : index
    %112 = memref.load %arg4[%c4_192, %c0_193] : memref<8x16xf32, #tpu.memory_space<smem>>
    %c4_194 = arith.constant 4 : index
    %c1_195 = arith.constant 1 : index
    %113 = memref.load %arg4[%c4_194, %c1_195] : memref<8x16xf32, #tpu.memory_space<smem>>
    %c4_196 = arith.constant 4 : index
    %c2_197 = arith.constant 2 : index
    %114 = memref.load %arg4[%c4_196, %c2_197] : memref<8x16xf32, #tpu.memory_space<smem>>
    %c4_198 = arith.constant 4 : index
    %c3_199 = arith.constant 3 : index
    %115 = memref.load %arg4[%c4_198, %c3_199] : memref<8x16xf32, #tpu.memory_space<smem>>
    %c4_200 = arith.constant 4 : index
    %c4_201 = arith.constant 4 : index
    %116 = memref.load %arg4[%c4_200, %c4_201] : memref<8x16xf32, #tpu.memory_space<smem>>
    %c4_202 = arith.constant 4 : index
    %c5_203 = arith.constant 5 : index
    %117 = memref.load %arg4[%c4_202, %c5_203] : memref<8x16xf32, #tpu.memory_space<smem>>
    %c4_204 = arith.constant 4 : index
    %c6_205 = arith.constant 6 : index
    %118 = memref.load %arg4[%c4_204, %c6_205] : memref<8x16xf32, #tpu.memory_space<smem>>
    %c4_206 = arith.constant 4 : index
    %c7_207 = arith.constant 7 : index
    %119 = memref.load %arg4[%c4_206, %c7_207] : memref<8x16xf32, #tpu.memory_space<smem>>
    %c4_208 = arith.constant 4 : index
    %c8_209 = arith.constant 8 : index
    %120 = memref.load %arg4[%c4_208, %c8_209] : memref<8x16xf32, #tpu.memory_space<smem>>
    %c4_210 = arith.constant 4 : index
    %c9_211 = arith.constant 9 : index
    %121 = memref.load %arg4[%c4_210, %c9_211] : memref<8x16xf32, #tpu.memory_space<smem>>
    %c4_212 = arith.constant 4 : index
    %c10_213 = arith.constant 10 : index
    %122 = memref.load %arg4[%c4_212, %c10_213] : memref<8x16xf32, #tpu.memory_space<smem>>
    %c4_214 = arith.constant 4 : index
    %c11_215 = arith.constant 11 : index
    %123 = memref.load %arg4[%c4_214, %c11_215] : memref<8x16xf32, #tpu.memory_space<smem>>
    %c4_216 = arith.constant 4 : index
    %c12_217 = arith.constant 12 : index
    %124 = memref.load %arg4[%c4_216, %c12_217] : memref<8x16xf32, #tpu.memory_space<smem>>
    %c4_218 = arith.constant 4 : index
    %c13_219 = arith.constant 13 : index
    %125 = memref.load %arg4[%c4_218, %c13_219] : memref<8x16xf32, #tpu.memory_space<smem>>
    %c4_220 = arith.constant 4 : index
    %c14_221 = arith.constant 14 : index
    %126 = memref.load %arg4[%c4_220, %c14_221] : memref<8x16xf32, #tpu.memory_space<smem>>
    %c4_222 = arith.constant 4 : index
    %c15_223 = arith.constant 15 : index
    %127 = memref.load %arg4[%c4_222, %c15_223] : memref<8x16xf32, #tpu.memory_space<smem>>
    %c5_224 = arith.constant 5 : index
    %c0_225 = arith.constant 0 : index
    %128 = memref.load %arg4[%c5_224, %c0_225] : memref<8x16xf32, #tpu.memory_space<smem>>
    %c5_226 = arith.constant 5 : index
    %c1_227 = arith.constant 1 : index
    %129 = memref.load %arg4[%c5_226, %c1_227] : memref<8x16xf32, #tpu.memory_space<smem>>
    %c5_228 = arith.constant 5 : index
    %c2_229 = arith.constant 2 : index
    %130 = memref.load %arg4[%c5_228, %c2_229] : memref<8x16xf32, #tpu.memory_space<smem>>
    %c5_230 = arith.constant 5 : index
    %c3_231 = arith.constant 3 : index
    %131 = memref.load %arg4[%c5_230, %c3_231] : memref<8x16xf32, #tpu.memory_space<smem>>
    %c5_232 = arith.constant 5 : index
    %c4_233 = arith.constant 4 : index
    %132 = memref.load %arg4[%c5_232, %c4_233] : memref<8x16xf32, #tpu.memory_space<smem>>
    %c5_234 = arith.constant 5 : index
    %c5_235 = arith.constant 5 : index
    %133 = memref.load %arg4[%c5_234, %c5_235] : memref<8x16xf32, #tpu.memory_space<smem>>
    %c5_236 = arith.constant 5 : index
    %c6_237 = arith.constant 6 : index
    %134 = memref.load %arg4[%c5_236, %c6_237] : memref<8x16xf32, #tpu.memory_space<smem>>
    %c5_238 = arith.constant 5 : index
    %c7_239 = arith.constant 7 : index
    %135 = memref.load %arg4[%c5_238, %c7_239] : memref<8x16xf32, #tpu.memory_space<smem>>
    %c5_240 = arith.constant 5 : index
    %c8_241 = arith.constant 8 : index
    %136 = memref.load %arg4[%c5_240, %c8_241] : memref<8x16xf32, #tpu.memory_space<smem>>
    %c5_242 = arith.constant 5 : index
    %c9_243 = arith.constant 9 : index
    %137 = memref.load %arg4[%c5_242, %c9_243] : memref<8x16xf32, #tpu.memory_space<smem>>
    %c5_244 = arith.constant 5 : index
    %c10_245 = arith.constant 10 : index
    %138 = memref.load %arg4[%c5_244, %c10_245] : memref<8x16xf32, #tpu.memory_space<smem>>
    %c5_246 = arith.constant 5 : index
    %c11_247 = arith.constant 11 : index
    %139 = memref.load %arg4[%c5_246, %c11_247] : memref<8x16xf32, #tpu.memory_space<smem>>
    %c5_248 = arith.constant 5 : index
    %c12_249 = arith.constant 12 : index
    %140 = memref.load %arg4[%c5_248, %c12_249] : memref<8x16xf32, #tpu.memory_space<smem>>
    %c5_250 = arith.constant 5 : index
    %c13_251 = arith.constant 13 : index
    %141 = memref.load %arg4[%c5_250, %c13_251] : memref<8x16xf32, #tpu.memory_space<smem>>
    %c5_252 = arith.constant 5 : index
    %c14_253 = arith.constant 14 : index
    %142 = memref.load %arg4[%c5_252, %c14_253] : memref<8x16xf32, #tpu.memory_space<smem>>
    %c5_254 = arith.constant 5 : index
    %c15_255 = arith.constant 15 : index
    %143 = memref.load %arg4[%c5_254, %c15_255] : memref<8x16xf32, #tpu.memory_space<smem>>
    %c6_256 = arith.constant 6 : index
    %c0_257 = arith.constant 0 : index
    %144 = memref.load %arg4[%c6_256, %c0_257] : memref<8x16xf32, #tpu.memory_space<smem>>
    %c6_258 = arith.constant 6 : index
    %c1_259 = arith.constant 1 : index
    %145 = memref.load %arg4[%c6_258, %c1_259] : memref<8x16xf32, #tpu.memory_space<smem>>
    %c6_260 = arith.constant 6 : index
    %c2_261 = arith.constant 2 : index
    %146 = memref.load %arg4[%c6_260, %c2_261] : memref<8x16xf32, #tpu.memory_space<smem>>
    %c6_262 = arith.constant 6 : index
    %c3_263 = arith.constant 3 : index
    %147 = memref.load %arg4[%c6_262, %c3_263] : memref<8x16xf32, #tpu.memory_space<smem>>
    %c6_264 = arith.constant 6 : index
    %c4_265 = arith.constant 4 : index
    %148 = memref.load %arg4[%c6_264, %c4_265] : memref<8x16xf32, #tpu.memory_space<smem>>
    %c6_266 = arith.constant 6 : index
    %c5_267 = arith.constant 5 : index
    %149 = memref.load %arg4[%c6_266, %c5_267] : memref<8x16xf32, #tpu.memory_space<smem>>
    %c6_268 = arith.constant 6 : index
    %c6_269 = arith.constant 6 : index
    %150 = memref.load %arg4[%c6_268, %c6_269] : memref<8x16xf32, #tpu.memory_space<smem>>
    %c6_270 = arith.constant 6 : index
    %c7_271 = arith.constant 7 : index
    %151 = memref.load %arg4[%c6_270, %c7_271] : memref<8x16xf32, #tpu.memory_space<smem>>
    %c6_272 = arith.constant 6 : index
    %c8_273 = arith.constant 8 : index
    %152 = memref.load %arg4[%c6_272, %c8_273] : memref<8x16xf32, #tpu.memory_space<smem>>
    %c6_274 = arith.constant 6 : index
    %c9_275 = arith.constant 9 : index
    %153 = memref.load %arg4[%c6_274, %c9_275] : memref<8x16xf32, #tpu.memory_space<smem>>
    %c6_276 = arith.constant 6 : index
    %c10_277 = arith.constant 10 : index
    %154 = memref.load %arg4[%c6_276, %c10_277] : memref<8x16xf32, #tpu.memory_space<smem>>
    %c6_278 = arith.constant 6 : index
    %c11_279 = arith.constant 11 : index
    %155 = memref.load %arg4[%c6_278, %c11_279] : memref<8x16xf32, #tpu.memory_space<smem>>
    %c6_280 = arith.constant 6 : index
    %c12_281 = arith.constant 12 : index
    %156 = memref.load %arg4[%c6_280, %c12_281] : memref<8x16xf32, #tpu.memory_space<smem>>
    %c6_282 = arith.constant 6 : index
    %c13_283 = arith.constant 13 : index
    %157 = memref.load %arg4[%c6_282, %c13_283] : memref<8x16xf32, #tpu.memory_space<smem>>
    %c6_284 = arith.constant 6 : index
    %c14_285 = arith.constant 14 : index
    %158 = memref.load %arg4[%c6_284, %c14_285] : memref<8x16xf32, #tpu.memory_space<smem>>
    %c6_286 = arith.constant 6 : index
    %c15_287 = arith.constant 15 : index
    %159 = memref.load %arg4[%c6_286, %c15_287] : memref<8x16xf32, #tpu.memory_space<smem>>
    %c7_288 = arith.constant 7 : index
    %c0_289 = arith.constant 0 : index
    %160 = memref.load %arg4[%c7_288, %c0_289] : memref<8x16xf32, #tpu.memory_space<smem>>
    %c7_290 = arith.constant 7 : index
    %c1_291 = arith.constant 1 : index
    %161 = memref.load %arg4[%c7_290, %c1_291] : memref<8x16xf32, #tpu.memory_space<smem>>
    %c7_292 = arith.constant 7 : index
    %c2_293 = arith.constant 2 : index
    %162 = memref.load %arg4[%c7_292, %c2_293] : memref<8x16xf32, #tpu.memory_space<smem>>
    %c7_294 = arith.constant 7 : index
    %c3_295 = arith.constant 3 : index
    %163 = memref.load %arg4[%c7_294, %c3_295] : memref<8x16xf32, #tpu.memory_space<smem>>
    %c7_296 = arith.constant 7 : index
    %c4_297 = arith.constant 4 : index
    %164 = memref.load %arg4[%c7_296, %c4_297] : memref<8x16xf32, #tpu.memory_space<smem>>
    %c7_298 = arith.constant 7 : index
    %c5_299 = arith.constant 5 : index
    %165 = memref.load %arg4[%c7_298, %c5_299] : memref<8x16xf32, #tpu.memory_space<smem>>
    %c7_300 = arith.constant 7 : index
    %c6_301 = arith.constant 6 : index
    %166 = memref.load %arg4[%c7_300, %c6_301] : memref<8x16xf32, #tpu.memory_space<smem>>
    %c7_302 = arith.constant 7 : index
    %c7_303 = arith.constant 7 : index
    %167 = memref.load %arg4[%c7_302, %c7_303] : memref<8x16xf32, #tpu.memory_space<smem>>
    %c7_304 = arith.constant 7 : index
    %c8_305 = arith.constant 8 : index
    %168 = memref.load %arg4[%c7_304, %c8_305] : memref<8x16xf32, #tpu.memory_space<smem>>
    %c7_306 = arith.constant 7 : index
    %c9_307 = arith.constant 9 : index
    %169 = memref.load %arg4[%c7_306, %c9_307] : memref<8x16xf32, #tpu.memory_space<smem>>
    %c7_308 = arith.constant 7 : index
    %c10_309 = arith.constant 10 : index
    %170 = memref.load %arg4[%c7_308, %c10_309] : memref<8x16xf32, #tpu.memory_space<smem>>
    %c7_310 = arith.constant 7 : index
    %c11_311 = arith.constant 11 : index
    %171 = memref.load %arg4[%c7_310, %c11_311] : memref<8x16xf32, #tpu.memory_space<smem>>
    %c7_312 = arith.constant 7 : index
    %c12_313 = arith.constant 12 : index
    %172 = memref.load %arg4[%c7_312, %c12_313] : memref<8x16xf32, #tpu.memory_space<smem>>
    %c7_314 = arith.constant 7 : index
    %c13_315 = arith.constant 13 : index
    %173 = memref.load %arg4[%c7_314, %c13_315] : memref<8x16xf32, #tpu.memory_space<smem>>
    %c7_316 = arith.constant 7 : index
    %c14_317 = arith.constant 14 : index
    %174 = memref.load %arg4[%c7_316, %c14_317] : memref<8x16xf32, #tpu.memory_space<smem>>
    %c7_318 = arith.constant 7 : index
    %c15_319 = arith.constant 15 : index
    %175 = memref.load %arg4[%c7_318, %c15_319] : memref<8x16xf32, #tpu.memory_space<smem>>
    %c0_320 = arith.constant 0 : index
    %176 = memref.load %arg5[%c0_320] : memref<8xf32, #tpu.memory_space<smem>>
    %c1_321 = arith.constant 1 : index
    %177 = memref.load %arg5[%c1_321] : memref<8xf32, #tpu.memory_space<smem>>
    %c2_322 = arith.constant 2 : index
    %178 = memref.load %arg5[%c2_322] : memref<8xf32, #tpu.memory_space<smem>>
    %c3_323 = arith.constant 3 : index
    %179 = memref.load %arg5[%c3_323] : memref<8xf32, #tpu.memory_space<smem>>
    %c4_324 = arith.constant 4 : index
    %180 = memref.load %arg5[%c4_324] : memref<8xf32, #tpu.memory_space<smem>>
    %c5_325 = arith.constant 5 : index
    %181 = memref.load %arg5[%c5_325] : memref<8xf32, #tpu.memory_space<smem>>
    %c6_326 = arith.constant 6 : index
    %182 = memref.load %arg5[%c6_326] : memref<8xf32, #tpu.memory_space<smem>>
    %c7_327 = arith.constant 7 : index
    %183 = memref.load %arg5[%c7_327] : memref<8xf32, #tpu.memory_space<smem>>
    %c0_328 = arith.constant 0 : index
    %c0_329 = arith.constant 0 : index
    %184 = memref.load %arg6[%c0_328, %c0_329] : memref<1x8xf32, #tpu.memory_space<smem>>
    %c0_330 = arith.constant 0 : index
    %c1_331 = arith.constant 1 : index
    %185 = memref.load %arg6[%c0_330, %c1_331] : memref<1x8xf32, #tpu.memory_space<smem>>
    %c0_332 = arith.constant 0 : index
    %c2_333 = arith.constant 2 : index
    %186 = memref.load %arg6[%c0_332, %c2_333] : memref<1x8xf32, #tpu.memory_space<smem>>
    %c0_334 = arith.constant 0 : index
    %c3_335 = arith.constant 3 : index
    %187 = memref.load %arg6[%c0_334, %c3_335] : memref<1x8xf32, #tpu.memory_space<smem>>
    %c0_336 = arith.constant 0 : index
    %c4_337 = arith.constant 4 : index
    %188 = memref.load %arg6[%c0_336, %c4_337] : memref<1x8xf32, #tpu.memory_space<smem>>
    %c0_338 = arith.constant 0 : index
    %c5_339 = arith.constant 5 : index
    %189 = memref.load %arg6[%c0_338, %c5_339] : memref<1x8xf32, #tpu.memory_space<smem>>
    %c0_340 = arith.constant 0 : index
    %c6_341 = arith.constant 6 : index
    %190 = memref.load %arg6[%c0_340, %c6_341] : memref<1x8xf32, #tpu.memory_space<smem>>
    %c0_342 = arith.constant 0 : index
    %c7_343 = arith.constant 7 : index
    %191 = memref.load %arg6[%c0_342, %c7_343] : memref<1x8xf32, #tpu.memory_space<smem>>
    %c0_344 = arith.constant 0 : index
    %192 = memref.load %arg7[%c0_344] : memref<1xf32, #tpu.memory_space<smem>>
    %c0_i32 = arith.constant 0 : i32
    %c8_i32 = arith.constant 8 : i32
    %193 = arith.muli %c0_i32, %c8_i32 : i32
    %194 = tpu.assume_multiple %193, 8 : i32
    %c0_345 = arith.constant 0 : index
    %195 = arith.index_cast %194 : i32 to index
    %c0_346 = arith.constant 0 : index
    %196 = vector.load %arg1[%c0_345, %195, %c0_346] : memref<2x8x128xf32, #tpu.memory_space<vmem>>, vector<1x8x128xf32>
    %197 = vector.shape_cast %196 : vector<1x8x128xf32> to vector<8x128xf32>
    %c1_347 = arith.constant 1 : index
    %198 = arith.index_cast %194 : i32 to index
    %c0_348 = arith.constant 0 : index
    %199 = vector.load %arg1[%c1_347, %198, %c0_348] : memref<2x8x128xf32, #tpu.memory_space<vmem>>, vector<1x8x128xf32>
    %200 = vector.shape_cast %199 : vector<1x8x128xf32> to vector<8x128xf32>
    %201 = vector.broadcast %0 : f32 to vector<8x128xf32>
    %202 = arith.mulf %201, %197 : vector<8x128xf32>
    %203 = vector.broadcast %1 : f32 to vector<8x128xf32>
    %204 = arith.mulf %203, %200 : vector<8x128xf32>
    %205 = arith.addf %202, %204 : vector<8x128xf32>
    %206 = vector.broadcast %32 : f32 to vector<8x128xf32>
    %207 = arith.addf %205, %206 : vector<8x128xf32>
    %cst = arith.constant 0.000000e+00 : f32
    %208 = vector.broadcast %cst : f32 to vector<8x128xf32>
    %209 = arith.maximumf %207, %208 : vector<8x128xf32>
    %210 = vector.broadcast %2 : f32 to vector<8x128xf32>
    %211 = arith.mulf %210, %197 : vector<8x128xf32>
    %212 = vector.broadcast %3 : f32 to vector<8x128xf32>
    %213 = arith.mulf %212, %200 : vector<8x128xf32>
    %214 = arith.addf %211, %213 : vector<8x128xf32>
    %215 = vector.broadcast %33 : f32 to vector<8x128xf32>
    %216 = arith.addf %214, %215 : vector<8x128xf32>
    %cst_349 = arith.constant 0.000000e+00 : f32
    %217 = vector.broadcast %cst_349 : f32 to vector<8x128xf32>
    %218 = arith.maximumf %216, %217 : vector<8x128xf32>
    %219 = vector.broadcast %4 : f32 to vector<8x128xf32>
    %220 = arith.mulf %219, %197 : vector<8x128xf32>
    %221 = vector.broadcast %5 : f32 to vector<8x128xf32>
    %222 = arith.mulf %221, %200 : vector<8x128xf32>
    %223 = arith.addf %220, %222 : vector<8x128xf32>
    %224 = vector.broadcast %34 : f32 to vector<8x128xf32>
    %225 = arith.addf %223, %224 : vector<8x128xf32>
    %cst_350 = arith.constant 0.000000e+00 : f32
    %226 = vector.broadcast %cst_350 : f32 to vector<8x128xf32>
    %227 = arith.maximumf %225, %226 : vector<8x128xf32>
    %228 = vector.broadcast %6 : f32 to vector<8x128xf32>
    %229 = arith.mulf %228, %197 : vector<8x128xf32>
    %230 = vector.broadcast %7 : f32 to vector<8x128xf32>
    %231 = arith.mulf %230, %200 : vector<8x128xf32>
    %232 = arith.addf %229, %231 : vector<8x128xf32>
    %233 = vector.broadcast %35 : f32 to vector<8x128xf32>
    %234 = arith.addf %232, %233 : vector<8x128xf32>
    %cst_351 = arith.constant 0.000000e+00 : f32
    %235 = vector.broadcast %cst_351 : f32 to vector<8x128xf32>
    %236 = arith.maximumf %234, %235 : vector<8x128xf32>
    %237 = vector.broadcast %8 : f32 to vector<8x128xf32>
    %238 = arith.mulf %237, %197 : vector<8x128xf32>
    %239 = vector.broadcast %9 : f32 to vector<8x128xf32>
    %240 = arith.mulf %239, %200 : vector<8x128xf32>
    %241 = arith.addf %238, %240 : vector<8x128xf32>
    %242 = vector.broadcast %36 : f32 to vector<8x128xf32>
    %243 = arith.addf %241, %242 : vector<8x128xf32>
    %cst_352 = arith.constant 0.000000e+00 : f32
    %244 = vector.broadcast %cst_352 : f32 to vector<8x128xf32>
    %245 = arith.maximumf %243, %244 : vector<8x128xf32>
    %246 = vector.broadcast %10 : f32 to vector<8x128xf32>
    %247 = arith.mulf %246, %197 : vector<8x128xf32>
    %248 = vector.broadcast %11 : f32 to vector<8x128xf32>
    %249 = arith.mulf %248, %200 : vector<8x128xf32>
    %250 = arith.addf %247, %249 : vector<8x128xf32>
    %251 = vector.broadcast %37 : f32 to vector<8x128xf32>
    %252 = arith.addf %250, %251 : vector<8x128xf32>
    %cst_353 = arith.constant 0.000000e+00 : f32
    %253 = vector.broadcast %cst_353 : f32 to vector<8x128xf32>
    %254 = arith.maximumf %252, %253 : vector<8x128xf32>
    %255 = vector.broadcast %12 : f32 to vector<8x128xf32>
    %256 = arith.mulf %255, %197 : vector<8x128xf32>
    %257 = vector.broadcast %13 : f32 to vector<8x128xf32>
    %258 = arith.mulf %257, %200 : vector<8x128xf32>
    %259 = arith.addf %256, %258 : vector<8x128xf32>
    %260 = vector.broadcast %38 : f32 to vector<8x128xf32>
    %261 = arith.addf %259, %260 : vector<8x128xf32>
    %cst_354 = arith.constant 0.000000e+00 : f32
    %262 = vector.broadcast %cst_354 : f32 to vector<8x128xf32>
    %263 = arith.maximumf %261, %262 : vector<8x128xf32>
    %264 = vector.broadcast %14 : f32 to vector<8x128xf32>
    %265 = arith.mulf %264, %197 : vector<8x128xf32>
    %266 = vector.broadcast %15 : f32 to vector<8x128xf32>
    %267 = arith.mulf %266, %200 : vector<8x128xf32>
    %268 = arith.addf %265, %267 : vector<8x128xf32>
    %269 = vector.broadcast %39 : f32 to vector<8x128xf32>
    %270 = arith.addf %268, %269 : vector<8x128xf32>
    %cst_355 = arith.constant 0.000000e+00 : f32
    %271 = vector.broadcast %cst_355 : f32 to vector<8x128xf32>
    %272 = arith.maximumf %270, %271 : vector<8x128xf32>
    %273 = vector.broadcast %16 : f32 to vector<8x128xf32>
    %274 = arith.mulf %273, %197 : vector<8x128xf32>
    %275 = vector.broadcast %17 : f32 to vector<8x128xf32>
    %276 = arith.mulf %275, %200 : vector<8x128xf32>
    %277 = arith.addf %274, %276 : vector<8x128xf32>
    %278 = vector.broadcast %40 : f32 to vector<8x128xf32>
    %279 = arith.addf %277, %278 : vector<8x128xf32>
    %cst_356 = arith.constant 0.000000e+00 : f32
    %280 = vector.broadcast %cst_356 : f32 to vector<8x128xf32>
    %281 = arith.maximumf %279, %280 : vector<8x128xf32>
    %282 = vector.broadcast %18 : f32 to vector<8x128xf32>
    %283 = arith.mulf %282, %197 : vector<8x128xf32>
    %284 = vector.broadcast %19 : f32 to vector<8x128xf32>
    %285 = arith.mulf %284, %200 : vector<8x128xf32>
    %286 = arith.addf %283, %285 : vector<8x128xf32>
    %287 = vector.broadcast %41 : f32 to vector<8x128xf32>
    %288 = arith.addf %286, %287 : vector<8x128xf32>
    %cst_357 = arith.constant 0.000000e+00 : f32
    %289 = vector.broadcast %cst_357 : f32 to vector<8x128xf32>
    %290 = arith.maximumf %288, %289 : vector<8x128xf32>
    %291 = vector.broadcast %20 : f32 to vector<8x128xf32>
    %292 = arith.mulf %291, %197 : vector<8x128xf32>
    %293 = vector.broadcast %21 : f32 to vector<8x128xf32>
    %294 = arith.mulf %293, %200 : vector<8x128xf32>
    %295 = arith.addf %292, %294 : vector<8x128xf32>
    %296 = vector.broadcast %42 : f32 to vector<8x128xf32>
    %297 = arith.addf %295, %296 : vector<8x128xf32>
    %cst_358 = arith.constant 0.000000e+00 : f32
    %298 = vector.broadcast %cst_358 : f32 to vector<8x128xf32>
    %299 = arith.maximumf %297, %298 : vector<8x128xf32>
    %300 = vector.broadcast %22 : f32 to vector<8x128xf32>
    %301 = arith.mulf %300, %197 : vector<8x128xf32>
    %302 = vector.broadcast %23 : f32 to vector<8x128xf32>
    %303 = arith.mulf %302, %200 : vector<8x128xf32>
    %304 = arith.addf %301, %303 : vector<8x128xf32>
    %305 = vector.broadcast %43 : f32 to vector<8x128xf32>
    %306 = arith.addf %304, %305 : vector<8x128xf32>
    %cst_359 = arith.constant 0.000000e+00 : f32
    %307 = vector.broadcast %cst_359 : f32 to vector<8x128xf32>
    %308 = arith.maximumf %306, %307 : vector<8x128xf32>
    %309 = vector.broadcast %24 : f32 to vector<8x128xf32>
    %310 = arith.mulf %309, %197 : vector<8x128xf32>
    %311 = vector.broadcast %25 : f32 to vector<8x128xf32>
    %312 = arith.mulf %311, %200 : vector<8x128xf32>
    %313 = arith.addf %310, %312 : vector<8x128xf32>
    %314 = vector.broadcast %44 : f32 to vector<8x128xf32>
    %315 = arith.addf %313, %314 : vector<8x128xf32>
    %cst_360 = arith.constant 0.000000e+00 : f32
    %316 = vector.broadcast %cst_360 : f32 to vector<8x128xf32>
    %317 = arith.maximumf %315, %316 : vector<8x128xf32>
    %318 = vector.broadcast %26 : f32 to vector<8x128xf32>
    %319 = arith.mulf %318, %197 : vector<8x128xf32>
    %320 = vector.broadcast %27 : f32 to vector<8x128xf32>
    %321 = arith.mulf %320, %200 : vector<8x128xf32>
    %322 = arith.addf %319, %321 : vector<8x128xf32>
    %323 = vector.broadcast %45 : f32 to vector<8x128xf32>
    %324 = arith.addf %322, %323 : vector<8x128xf32>
    %cst_361 = arith.constant 0.000000e+00 : f32
    %325 = vector.broadcast %cst_361 : f32 to vector<8x128xf32>
    %326 = arith.maximumf %324, %325 : vector<8x128xf32>
    %327 = vector.broadcast %28 : f32 to vector<8x128xf32>
    %328 = arith.mulf %327, %197 : vector<8x128xf32>
    %329 = vector.broadcast %29 : f32 to vector<8x128xf32>
    %330 = arith.mulf %329, %200 : vector<8x128xf32>
    %331 = arith.addf %328, %330 : vector<8x128xf32>
    %332 = vector.broadcast %46 : f32 to vector<8x128xf32>
    %333 = arith.addf %331, %332 : vector<8x128xf32>
    %cst_362 = arith.constant 0.000000e+00 : f32
    %334 = vector.broadcast %cst_362 : f32 to vector<8x128xf32>
    %335 = arith.maximumf %333, %334 : vector<8x128xf32>
    %336 = vector.broadcast %30 : f32 to vector<8x128xf32>
    %337 = arith.mulf %336, %197 : vector<8x128xf32>
    %338 = vector.broadcast %31 : f32 to vector<8x128xf32>
    %339 = arith.mulf %338, %200 : vector<8x128xf32>
    %340 = arith.addf %337, %339 : vector<8x128xf32>
    %341 = vector.broadcast %47 : f32 to vector<8x128xf32>
    %342 = arith.addf %340, %341 : vector<8x128xf32>
    %cst_363 = arith.constant 0.000000e+00 : f32
    %343 = vector.broadcast %cst_363 : f32 to vector<8x128xf32>
    %344 = arith.maximumf %342, %343 : vector<8x128xf32>
    %345 = vector.broadcast %48 : f32 to vector<8x128xf32>
    %346 = arith.mulf %345, %209 : vector<8x128xf32>
    %347 = vector.broadcast %176 : f32 to vector<8x128xf32>
    %348 = arith.addf %347, %346 : vector<8x128xf32>
    %349 = vector.broadcast %49 : f32 to vector<8x128xf32>
    %350 = arith.mulf %349, %218 : vector<8x128xf32>
    %351 = arith.addf %348, %350 : vector<8x128xf32>
    %352 = vector.broadcast %50 : f32 to vector<8x128xf32>
    %353 = arith.mulf %352, %227 : vector<8x128xf32>
    %354 = arith.addf %351, %353 : vector<8x128xf32>
    %355 = vector.broadcast %51 : f32 to vector<8x128xf32>
    %356 = arith.mulf %355, %236 : vector<8x128xf32>
    %357 = arith.addf %354, %356 : vector<8x128xf32>
    %358 = vector.broadcast %52 : f32 to vector<8x128xf32>
    %359 = arith.mulf %358, %245 : vector<8x128xf32>
    %360 = arith.addf %357, %359 : vector<8x128xf32>
    %361 = vector.broadcast %53 : f32 to vector<8x128xf32>
    %362 = arith.mulf %361, %254 : vector<8x128xf32>
    %363 = arith.addf %360, %362 : vector<8x128xf32>
    %364 = vector.broadcast %54 : f32 to vector<8x128xf32>
    %365 = arith.mulf %364, %263 : vector<8x128xf32>
    %366 = arith.addf %363, %365 : vector<8x128xf32>
    %367 = vector.broadcast %55 : f32 to vector<8x128xf32>
    %368 = arith.mulf %367, %272 : vector<8x128xf32>
    %369 = arith.addf %366, %368 : vector<8x128xf32>
    %370 = vector.broadcast %56 : f32 to vector<8x128xf32>
    %371 = arith.mulf %370, %281 : vector<8x128xf32>
    %372 = arith.addf %369, %371 : vector<8x128xf32>
    %373 = vector.broadcast %57 : f32 to vector<8x128xf32>
    %374 = arith.mulf %373, %290 : vector<8x128xf32>
    %375 = arith.addf %372, %374 : vector<8x128xf32>
    %376 = vector.broadcast %58 : f32 to vector<8x128xf32>
    %377 = arith.mulf %376, %299 : vector<8x128xf32>
    %378 = arith.addf %375, %377 : vector<8x128xf32>
    %379 = vector.broadcast %59 : f32 to vector<8x128xf32>
    %380 = arith.mulf %379, %308 : vector<8x128xf32>
    %381 = arith.addf %378, %380 : vector<8x128xf32>
    %382 = vector.broadcast %60 : f32 to vector<8x128xf32>
    %383 = arith.mulf %382, %317 : vector<8x128xf32>
    %384 = arith.addf %381, %383 : vector<8x128xf32>
    %385 = vector.broadcast %61 : f32 to vector<8x128xf32>
    %386 = arith.mulf %385, %326 : vector<8x128xf32>
    %387 = arith.addf %384, %386 : vector<8x128xf32>
    %388 = vector.broadcast %62 : f32 to vector<8x128xf32>
    %389 = arith.mulf %388, %335 : vector<8x128xf32>
    %390 = arith.addf %387, %389 : vector<8x128xf32>
    %391 = vector.broadcast %63 : f32 to vector<8x128xf32>
    %392 = arith.mulf %391, %344 : vector<8x128xf32>
    %393 = arith.addf %390, %392 : vector<8x128xf32>
    %cst_364 = arith.constant 0.000000e+00 : f32
    %394 = vector.broadcast %cst_364 : f32 to vector<8x128xf32>
    %395 = arith.maximumf %393, %394 : vector<8x128xf32>
    %396 = vector.broadcast %64 : f32 to vector<8x128xf32>
    %397 = arith.mulf %396, %209 : vector<8x128xf32>
    %398 = vector.broadcast %177 : f32 to vector<8x128xf32>
    %399 = arith.addf %398, %397 : vector<8x128xf32>
    %400 = vector.broadcast %65 : f32 to vector<8x128xf32>
    %401 = arith.mulf %400, %218 : vector<8x128xf32>
    %402 = arith.addf %399, %401 : vector<8x128xf32>
    %403 = vector.broadcast %66 : f32 to vector<8x128xf32>
    %404 = arith.mulf %403, %227 : vector<8x128xf32>
    %405 = arith.addf %402, %404 : vector<8x128xf32>
    %406 = vector.broadcast %67 : f32 to vector<8x128xf32>
    %407 = arith.mulf %406, %236 : vector<8x128xf32>
    %408 = arith.addf %405, %407 : vector<8x128xf32>
    %409 = vector.broadcast %68 : f32 to vector<8x128xf32>
    %410 = arith.mulf %409, %245 : vector<8x128xf32>
    %411 = arith.addf %408, %410 : vector<8x128xf32>
    %412 = vector.broadcast %69 : f32 to vector<8x128xf32>
    %413 = arith.mulf %412, %254 : vector<8x128xf32>
    %414 = arith.addf %411, %413 : vector<8x128xf32>
    %415 = vector.broadcast %70 : f32 to vector<8x128xf32>
    %416 = arith.mulf %415, %263 : vector<8x128xf32>
    %417 = arith.addf %414, %416 : vector<8x128xf32>
    %418 = vector.broadcast %71 : f32 to vector<8x128xf32>
    %419 = arith.mulf %418, %272 : vector<8x128xf32>
    %420 = arith.addf %417, %419 : vector<8x128xf32>
    %421 = vector.broadcast %72 : f32 to vector<8x128xf32>
    %422 = arith.mulf %421, %281 : vector<8x128xf32>
    %423 = arith.addf %420, %422 : vector<8x128xf32>
    %424 = vector.broadcast %73 : f32 to vector<8x128xf32>
    %425 = arith.mulf %424, %290 : vector<8x128xf32>
    %426 = arith.addf %423, %425 : vector<8x128xf32>
    %427 = vector.broadcast %74 : f32 to vector<8x128xf32>
    %428 = arith.mulf %427, %299 : vector<8x128xf32>
    %429 = arith.addf %426, %428 : vector<8x128xf32>
    %430 = vector.broadcast %75 : f32 to vector<8x128xf32>
    %431 = arith.mulf %430, %308 : vector<8x128xf32>
    %432 = arith.addf %429, %431 : vector<8x128xf32>
    %433 = vector.broadcast %76 : f32 to vector<8x128xf32>
    %434 = arith.mulf %433, %317 : vector<8x128xf32>
    %435 = arith.addf %432, %434 : vector<8x128xf32>
    %436 = vector.broadcast %77 : f32 to vector<8x128xf32>
    %437 = arith.mulf %436, %326 : vector<8x128xf32>
    %438 = arith.addf %435, %437 : vector<8x128xf32>
    %439 = vector.broadcast %78 : f32 to vector<8x128xf32>
    %440 = arith.mulf %439, %335 : vector<8x128xf32>
    %441 = arith.addf %438, %440 : vector<8x128xf32>
    %442 = vector.broadcast %79 : f32 to vector<8x128xf32>
    %443 = arith.mulf %442, %344 : vector<8x128xf32>
    %444 = arith.addf %441, %443 : vector<8x128xf32>
    %cst_365 = arith.constant 0.000000e+00 : f32
    %445 = vector.broadcast %cst_365 : f32 to vector<8x128xf32>
    %446 = arith.maximumf %444, %445 : vector<8x128xf32>
    %447 = vector.broadcast %80 : f32 to vector<8x128xf32>
    %448 = arith.mulf %447, %209 : vector<8x128xf32>
    %449 = vector.broadcast %178 : f32 to vector<8x128xf32>
    %450 = arith.addf %449, %448 : vector<8x128xf32>
    %451 = vector.broadcast %81 : f32 to vector<8x128xf32>
    %452 = arith.mulf %451, %218 : vector<8x128xf32>
    %453 = arith.addf %450, %452 : vector<8x128xf32>
    %454 = vector.broadcast %82 : f32 to vector<8x128xf32>
    %455 = arith.mulf %454, %227 : vector<8x128xf32>
    %456 = arith.addf %453, %455 : vector<8x128xf32>
    %457 = vector.broadcast %83 : f32 to vector<8x128xf32>
    %458 = arith.mulf %457, %236 : vector<8x128xf32>
    %459 = arith.addf %456, %458 : vector<8x128xf32>
    %460 = vector.broadcast %84 : f32 to vector<8x128xf32>
    %461 = arith.mulf %460, %245 : vector<8x128xf32>
    %462 = arith.addf %459, %461 : vector<8x128xf32>
    %463 = vector.broadcast %85 : f32 to vector<8x128xf32>
    %464 = arith.mulf %463, %254 : vector<8x128xf32>
    %465 = arith.addf %462, %464 : vector<8x128xf32>
    %466 = vector.broadcast %86 : f32 to vector<8x128xf32>
    %467 = arith.mulf %466, %263 : vector<8x128xf32>
    %468 = arith.addf %465, %467 : vector<8x128xf32>
    %469 = vector.broadcast %87 : f32 to vector<8x128xf32>
    %470 = arith.mulf %469, %272 : vector<8x128xf32>
    %471 = arith.addf %468, %470 : vector<8x128xf32>
    %472 = vector.broadcast %88 : f32 to vector<8x128xf32>
    %473 = arith.mulf %472, %281 : vector<8x128xf32>
    %474 = arith.addf %471, %473 : vector<8x128xf32>
    %475 = vector.broadcast %89 : f32 to vector<8x128xf32>
    %476 = arith.mulf %475, %290 : vector<8x128xf32>
    %477 = arith.addf %474, %476 : vector<8x128xf32>
    %478 = vector.broadcast %90 : f32 to vector<8x128xf32>
    %479 = arith.mulf %478, %299 : vector<8x128xf32>
    %480 = arith.addf %477, %479 : vector<8x128xf32>
    %481 = vector.broadcast %91 : f32 to vector<8x128xf32>
    %482 = arith.mulf %481, %308 : vector<8x128xf32>
    %483 = arith.addf %480, %482 : vector<8x128xf32>
    %484 = vector.broadcast %92 : f32 to vector<8x128xf32>
    %485 = arith.mulf %484, %317 : vector<8x128xf32>
    %486 = arith.addf %483, %485 : vector<8x128xf32>
    %487 = vector.broadcast %93 : f32 to vector<8x128xf32>
    %488 = arith.mulf %487, %326 : vector<8x128xf32>
    %489 = arith.addf %486, %488 : vector<8x128xf32>
    %490 = vector.broadcast %94 : f32 to vector<8x128xf32>
    %491 = arith.mulf %490, %335 : vector<8x128xf32>
    %492 = arith.addf %489, %491 : vector<8x128xf32>
    %493 = vector.broadcast %95 : f32 to vector<8x128xf32>
    %494 = arith.mulf %493, %344 : vector<8x128xf32>
    %495 = arith.addf %492, %494 : vector<8x128xf32>
    %cst_366 = arith.constant 0.000000e+00 : f32
    %496 = vector.broadcast %cst_366 : f32 to vector<8x128xf32>
    %497 = arith.maximumf %495, %496 : vector<8x128xf32>
    %498 = vector.broadcast %96 : f32 to vector<8x128xf32>
    %499 = arith.mulf %498, %209 : vector<8x128xf32>
    %500 = vector.broadcast %179 : f32 to vector<8x128xf32>
    %501 = arith.addf %500, %499 : vector<8x128xf32>
    %502 = vector.broadcast %97 : f32 to vector<8x128xf32>
    %503 = arith.mulf %502, %218 : vector<8x128xf32>
    %504 = arith.addf %501, %503 : vector<8x128xf32>
    %505 = vector.broadcast %98 : f32 to vector<8x128xf32>
    %506 = arith.mulf %505, %227 : vector<8x128xf32>
    %507 = arith.addf %504, %506 : vector<8x128xf32>
    %508 = vector.broadcast %99 : f32 to vector<8x128xf32>
    %509 = arith.mulf %508, %236 : vector<8x128xf32>
    %510 = arith.addf %507, %509 : vector<8x128xf32>
    %511 = vector.broadcast %100 : f32 to vector<8x128xf32>
    %512 = arith.mulf %511, %245 : vector<8x128xf32>
    %513 = arith.addf %510, %512 : vector<8x128xf32>
    %514 = vector.broadcast %101 : f32 to vector<8x128xf32>
    %515 = arith.mulf %514, %254 : vector<8x128xf32>
    %516 = arith.addf %513, %515 : vector<8x128xf32>
    %517 = vector.broadcast %102 : f32 to vector<8x128xf32>
    %518 = arith.mulf %517, %263 : vector<8x128xf32>
    %519 = arith.addf %516, %518 : vector<8x128xf32>
    %520 = vector.broadcast %103 : f32 to vector<8x128xf32>
    %521 = arith.mulf %520, %272 : vector<8x128xf32>
    %522 = arith.addf %519, %521 : vector<8x128xf32>
    %523 = vector.broadcast %104 : f32 to vector<8x128xf32>
    %524 = arith.mulf %523, %281 : vector<8x128xf32>
    %525 = arith.addf %522, %524 : vector<8x128xf32>
    %526 = vector.broadcast %105 : f32 to vector<8x128xf32>
    %527 = arith.mulf %526, %290 : vector<8x128xf32>
    %528 = arith.addf %525, %527 : vector<8x128xf32>
    %529 = vector.broadcast %106 : f32 to vector<8x128xf32>
    %530 = arith.mulf %529, %299 : vector<8x128xf32>
    %531 = arith.addf %528, %530 : vector<8x128xf32>
    %532 = vector.broadcast %107 : f32 to vector<8x128xf32>
    %533 = arith.mulf %532, %308 : vector<8x128xf32>
    %534 = arith.addf %531, %533 : vector<8x128xf32>
    %535 = vector.broadcast %108 : f32 to vector<8x128xf32>
    %536 = arith.mulf %535, %317 : vector<8x128xf32>
    %537 = arith.addf %534, %536 : vector<8x128xf32>
    %538 = vector.broadcast %109 : f32 to vector<8x128xf32>
    %539 = arith.mulf %538, %326 : vector<8x128xf32>
    %540 = arith.addf %537, %539 : vector<8x128xf32>
    %541 = vector.broadcast %110 : f32 to vector<8x128xf32>
    %542 = arith.mulf %541, %335 : vector<8x128xf32>
    %543 = arith.addf %540, %542 : vector<8x128xf32>
    %544 = vector.broadcast %111 : f32 to vector<8x128xf32>
    %545 = arith.mulf %544, %344 : vector<8x128xf32>
    %546 = arith.addf %543, %545 : vector<8x128xf32>
    %cst_367 = arith.constant 0.000000e+00 : f32
    %547 = vector.broadcast %cst_367 : f32 to vector<8x128xf32>
    %548 = arith.maximumf %546, %547 : vector<8x128xf32>
    %549 = vector.broadcast %112 : f32 to vector<8x128xf32>
    %550 = arith.mulf %549, %209 : vector<8x128xf32>
    %551 = vector.broadcast %180 : f32 to vector<8x128xf32>
    %552 = arith.addf %551, %550 : vector<8x128xf32>
    %553 = vector.broadcast %113 : f32 to vector<8x128xf32>
    %554 = arith.mulf %553, %218 : vector<8x128xf32>
    %555 = arith.addf %552, %554 : vector<8x128xf32>
    %556 = vector.broadcast %114 : f32 to vector<8x128xf32>
    %557 = arith.mulf %556, %227 : vector<8x128xf32>
    %558 = arith.addf %555, %557 : vector<8x128xf32>
    %559 = vector.broadcast %115 : f32 to vector<8x128xf32>
    %560 = arith.mulf %559, %236 : vector<8x128xf32>
    %561 = arith.addf %558, %560 : vector<8x128xf32>
    %562 = vector.broadcast %116 : f32 to vector<8x128xf32>
    %563 = arith.mulf %562, %245 : vector<8x128xf32>
    %564 = arith.addf %561, %563 : vector<8x128xf32>
    %565 = vector.broadcast %117 : f32 to vector<8x128xf32>
    %566 = arith.mulf %565, %254 : vector<8x128xf32>
    %567 = arith.addf %564, %566 : vector<8x128xf32>
    %568 = vector.broadcast %118 : f32 to vector<8x128xf32>
    %569 = arith.mulf %568, %263 : vector<8x128xf32>
    %570 = arith.addf %567, %569 : vector<8x128xf32>
    %571 = vector.broadcast %119 : f32 to vector<8x128xf32>
    %572 = arith.mulf %571, %272 : vector<8x128xf32>
    %573 = arith.addf %570, %572 : vector<8x128xf32>
    %574 = vector.broadcast %120 : f32 to vector<8x128xf32>
    %575 = arith.mulf %574, %281 : vector<8x128xf32>
    %576 = arith.addf %573, %575 : vector<8x128xf32>
    %577 = vector.broadcast %121 : f32 to vector<8x128xf32>
    %578 = arith.mulf %577, %290 : vector<8x128xf32>
    %579 = arith.addf %576, %578 : vector<8x128xf32>
    %580 = vector.broadcast %122 : f32 to vector<8x128xf32>
    %581 = arith.mulf %580, %299 : vector<8x128xf32>
    %582 = arith.addf %579, %581 : vector<8x128xf32>
    %583 = vector.broadcast %123 : f32 to vector<8x128xf32>
    %584 = arith.mulf %583, %308 : vector<8x128xf32>
    %585 = arith.addf %582, %584 : vector<8x128xf32>
    %586 = vector.broadcast %124 : f32 to vector<8x128xf32>
    %587 = arith.mulf %586, %317 : vector<8x128xf32>
    %588 = arith.addf %585, %587 : vector<8x128xf32>
    %589 = vector.broadcast %125 : f32 to vector<8x128xf32>
    %590 = arith.mulf %589, %326 : vector<8x128xf32>
    %591 = arith.addf %588, %590 : vector<8x128xf32>
    %592 = vector.broadcast %126 : f32 to vector<8x128xf32>
    %593 = arith.mulf %592, %335 : vector<8x128xf32>
    %594 = arith.addf %591, %593 : vector<8x128xf32>
    %595 = vector.broadcast %127 : f32 to vector<8x128xf32>
    %596 = arith.mulf %595, %344 : vector<8x128xf32>
    %597 = arith.addf %594, %596 : vector<8x128xf32>
    %cst_368 = arith.constant 0.000000e+00 : f32
    %598 = vector.broadcast %cst_368 : f32 to vector<8x128xf32>
    %599 = arith.maximumf %597, %598 : vector<8x128xf32>
    %600 = vector.broadcast %128 : f32 to vector<8x128xf32>
    %601 = arith.mulf %600, %209 : vector<8x128xf32>
    %602 = vector.broadcast %181 : f32 to vector<8x128xf32>
    %603 = arith.addf %602, %601 : vector<8x128xf32>
    %604 = vector.broadcast %129 : f32 to vector<8x128xf32>
    %605 = arith.mulf %604, %218 : vector<8x128xf32>
    %606 = arith.addf %603, %605 : vector<8x128xf32>
    %607 = vector.broadcast %130 : f32 to vector<8x128xf32>
    %608 = arith.mulf %607, %227 : vector<8x128xf32>
    %609 = arith.addf %606, %608 : vector<8x128xf32>
    %610 = vector.broadcast %131 : f32 to vector<8x128xf32>
    %611 = arith.mulf %610, %236 : vector<8x128xf32>
    %612 = arith.addf %609, %611 : vector<8x128xf32>
    %613 = vector.broadcast %132 : f32 to vector<8x128xf32>
    %614 = arith.mulf %613, %245 : vector<8x128xf32>
    %615 = arith.addf %612, %614 : vector<8x128xf32>
    %616 = vector.broadcast %133 : f32 to vector<8x128xf32>
    %617 = arith.mulf %616, %254 : vector<8x128xf32>
    %618 = arith.addf %615, %617 : vector<8x128xf32>
    %619 = vector.broadcast %134 : f32 to vector<8x128xf32>
    %620 = arith.mulf %619, %263 : vector<8x128xf32>
    %621 = arith.addf %618, %620 : vector<8x128xf32>
    %622 = vector.broadcast %135 : f32 to vector<8x128xf32>
    %623 = arith.mulf %622, %272 : vector<8x128xf32>
    %624 = arith.addf %621, %623 : vector<8x128xf32>
    %625 = vector.broadcast %136 : f32 to vector<8x128xf32>
    %626 = arith.mulf %625, %281 : vector<8x128xf32>
    %627 = arith.addf %624, %626 : vector<8x128xf32>
    %628 = vector.broadcast %137 : f32 to vector<8x128xf32>
    %629 = arith.mulf %628, %290 : vector<8x128xf32>
    %630 = arith.addf %627, %629 : vector<8x128xf32>
    %631 = vector.broadcast %138 : f32 to vector<8x128xf32>
    %632 = arith.mulf %631, %299 : vector<8x128xf32>
    %633 = arith.addf %630, %632 : vector<8x128xf32>
    %634 = vector.broadcast %139 : f32 to vector<8x128xf32>
    %635 = arith.mulf %634, %308 : vector<8x128xf32>
    %636 = arith.addf %633, %635 : vector<8x128xf32>
    %637 = vector.broadcast %140 : f32 to vector<8x128xf32>
    %638 = arith.mulf %637, %317 : vector<8x128xf32>
    %639 = arith.addf %636, %638 : vector<8x128xf32>
    %640 = vector.broadcast %141 : f32 to vector<8x128xf32>
    %641 = arith.mulf %640, %326 : vector<8x128xf32>
    %642 = arith.addf %639, %641 : vector<8x128xf32>
    %643 = vector.broadcast %142 : f32 to vector<8x128xf32>
    %644 = arith.mulf %643, %335 : vector<8x128xf32>
    %645 = arith.addf %642, %644 : vector<8x128xf32>
    %646 = vector.broadcast %143 : f32 to vector<8x128xf32>
    %647 = arith.mulf %646, %344 : vector<8x128xf32>
    %648 = arith.addf %645, %647 : vector<8x128xf32>
    %cst_369 = arith.constant 0.000000e+00 : f32
    %649 = vector.broadcast %cst_369 : f32 to vector<8x128xf32>
    %650 = arith.maximumf %648, %649 : vector<8x128xf32>
    %651 = vector.broadcast %144 : f32 to vector<8x128xf32>
    %652 = arith.mulf %651, %209 : vector<8x128xf32>
    %653 = vector.broadcast %182 : f32 to vector<8x128xf32>
    %654 = arith.addf %653, %652 : vector<8x128xf32>
    %655 = vector.broadcast %145 : f32 to vector<8x128xf32>
    %656 = arith.mulf %655, %218 : vector<8x128xf32>
    %657 = arith.addf %654, %656 : vector<8x128xf32>
    %658 = vector.broadcast %146 : f32 to vector<8x128xf32>
    %659 = arith.mulf %658, %227 : vector<8x128xf32>
    %660 = arith.addf %657, %659 : vector<8x128xf32>
    %661 = vector.broadcast %147 : f32 to vector<8x128xf32>
    %662 = arith.mulf %661, %236 : vector<8x128xf32>
    %663 = arith.addf %660, %662 : vector<8x128xf32>
    %664 = vector.broadcast %148 : f32 to vector<8x128xf32>
    %665 = arith.mulf %664, %245 : vector<8x128xf32>
    %666 = arith.addf %663, %665 : vector<8x128xf32>
    %667 = vector.broadcast %149 : f32 to vector<8x128xf32>
    %668 = arith.mulf %667, %254 : vector<8x128xf32>
    %669 = arith.addf %666, %668 : vector<8x128xf32>
    %670 = vector.broadcast %150 : f32 to vector<8x128xf32>
    %671 = arith.mulf %670, %263 : vector<8x128xf32>
    %672 = arith.addf %669, %671 : vector<8x128xf32>
    %673 = vector.broadcast %151 : f32 to vector<8x128xf32>
    %674 = arith.mulf %673, %272 : vector<8x128xf32>
    %675 = arith.addf %672, %674 : vector<8x128xf32>
    %676 = vector.broadcast %152 : f32 to vector<8x128xf32>
    %677 = arith.mulf %676, %281 : vector<8x128xf32>
    %678 = arith.addf %675, %677 : vector<8x128xf32>
    %679 = vector.broadcast %153 : f32 to vector<8x128xf32>
    %680 = arith.mulf %679, %290 : vector<8x128xf32>
    %681 = arith.addf %678, %680 : vector<8x128xf32>
    %682 = vector.broadcast %154 : f32 to vector<8x128xf32>
    %683 = arith.mulf %682, %299 : vector<8x128xf32>
    %684 = arith.addf %681, %683 : vector<8x128xf32>
    %685 = vector.broadcast %155 : f32 to vector<8x128xf32>
    %686 = arith.mulf %685, %308 : vector<8x128xf32>
    %687 = arith.addf %684, %686 : vector<8x128xf32>
    %688 = vector.broadcast %156 : f32 to vector<8x128xf32>
    %689 = arith.mulf %688, %317 : vector<8x128xf32>
    %690 = arith.addf %687, %689 : vector<8x128xf32>
    %691 = vector.broadcast %157 : f32 to vector<8x128xf32>
    %692 = arith.mulf %691, %326 : vector<8x128xf32>
    %693 = arith.addf %690, %692 : vector<8x128xf32>
    %694 = vector.broadcast %158 : f32 to vector<8x128xf32>
    %695 = arith.mulf %694, %335 : vector<8x128xf32>
    %696 = arith.addf %693, %695 : vector<8x128xf32>
    %697 = vector.broadcast %159 : f32 to vector<8x128xf32>
    %698 = arith.mulf %697, %344 : vector<8x128xf32>
    %699 = arith.addf %696, %698 : vector<8x128xf32>
    %cst_370 = arith.constant 0.000000e+00 : f32
    %700 = vector.broadcast %cst_370 : f32 to vector<8x128xf32>
    %701 = arith.maximumf %699, %700 : vector<8x128xf32>
    %702 = vector.broadcast %160 : f32 to vector<8x128xf32>
    %703 = arith.mulf %702, %209 : vector<8x128xf32>
    %704 = vector.broadcast %183 : f32 to vector<8x128xf32>
    %705 = arith.addf %704, %703 : vector<8x128xf32>
    %706 = vector.broadcast %161 : f32 to vector<8x128xf32>
    %707 = arith.mulf %706, %218 : vector<8x128xf32>
    %708 = arith.addf %705, %707 : vector<8x128xf32>
    %709 = vector.broadcast %162 : f32 to vector<8x128xf32>
    %710 = arith.mulf %709, %227 : vector<8x128xf32>
    %711 = arith.addf %708, %710 : vector<8x128xf32>
    %712 = vector.broadcast %163 : f32 to vector<8x128xf32>
    %713 = arith.mulf %712, %236 : vector<8x128xf32>
    %714 = arith.addf %711, %713 : vector<8x128xf32>
    %715 = vector.broadcast %164 : f32 to vector<8x128xf32>
    %716 = arith.mulf %715, %245 : vector<8x128xf32>
    %717 = arith.addf %714, %716 : vector<8x128xf32>
    %718 = vector.broadcast %165 : f32 to vector<8x128xf32>
    %719 = arith.mulf %718, %254 : vector<8x128xf32>
    %720 = arith.addf %717, %719 : vector<8x128xf32>
    %721 = vector.broadcast %166 : f32 to vector<8x128xf32>
    %722 = arith.mulf %721, %263 : vector<8x128xf32>
    %723 = arith.addf %720, %722 : vector<8x128xf32>
    %724 = vector.broadcast %167 : f32 to vector<8x128xf32>
    %725 = arith.mulf %724, %272 : vector<8x128xf32>
    %726 = arith.addf %723, %725 : vector<8x128xf32>
    %727 = vector.broadcast %168 : f32 to vector<8x128xf32>
    %728 = arith.mulf %727, %281 : vector<8x128xf32>
    %729 = arith.addf %726, %728 : vector<8x128xf32>
    %730 = vector.broadcast %169 : f32 to vector<8x128xf32>
    %731 = arith.mulf %730, %290 : vector<8x128xf32>
    %732 = arith.addf %729, %731 : vector<8x128xf32>
    %733 = vector.broadcast %170 : f32 to vector<8x128xf32>
    %734 = arith.mulf %733, %299 : vector<8x128xf32>
    %735 = arith.addf %732, %734 : vector<8x128xf32>
    %736 = vector.broadcast %171 : f32 to vector<8x128xf32>
    %737 = arith.mulf %736, %308 : vector<8x128xf32>
    %738 = arith.addf %735, %737 : vector<8x128xf32>
    %739 = vector.broadcast %172 : f32 to vector<8x128xf32>
    %740 = arith.mulf %739, %317 : vector<8x128xf32>
    %741 = arith.addf %738, %740 : vector<8x128xf32>
    %742 = vector.broadcast %173 : f32 to vector<8x128xf32>
    %743 = arith.mulf %742, %326 : vector<8x128xf32>
    %744 = arith.addf %741, %743 : vector<8x128xf32>
    %745 = vector.broadcast %174 : f32 to vector<8x128xf32>
    %746 = arith.mulf %745, %335 : vector<8x128xf32>
    %747 = arith.addf %744, %746 : vector<8x128xf32>
    %748 = vector.broadcast %175 : f32 to vector<8x128xf32>
    %749 = arith.mulf %748, %344 : vector<8x128xf32>
    %750 = arith.addf %747, %749 : vector<8x128xf32>
    %cst_371 = arith.constant 0.000000e+00 : f32
    %751 = vector.broadcast %cst_371 : f32 to vector<8x128xf32>
    %752 = arith.maximumf %750, %751 : vector<8x128xf32>
    %753 = vector.broadcast %184 : f32 to vector<8x128xf32>
    %754 = arith.mulf %753, %395 : vector<8x128xf32>
    %755 = vector.broadcast %192 : f32 to vector<8x128xf32>
    %756 = arith.addf %755, %754 : vector<8x128xf32>
    %757 = vector.broadcast %185 : f32 to vector<8x128xf32>
    %758 = arith.mulf %757, %446 : vector<8x128xf32>
    %759 = arith.addf %756, %758 : vector<8x128xf32>
    %760 = vector.broadcast %186 : f32 to vector<8x128xf32>
    %761 = arith.mulf %760, %497 : vector<8x128xf32>
    %762 = arith.addf %759, %761 : vector<8x128xf32>
    %763 = vector.broadcast %187 : f32 to vector<8x128xf32>
    %764 = arith.mulf %763, %548 : vector<8x128xf32>
    %765 = arith.addf %762, %764 : vector<8x128xf32>
    %766 = vector.broadcast %188 : f32 to vector<8x128xf32>
    %767 = arith.mulf %766, %599 : vector<8x128xf32>
    %768 = arith.addf %765, %767 : vector<8x128xf32>
    %769 = vector.broadcast %189 : f32 to vector<8x128xf32>
    %770 = arith.mulf %769, %650 : vector<8x128xf32>
    %771 = arith.addf %768, %770 : vector<8x128xf32>
    %772 = vector.broadcast %190 : f32 to vector<8x128xf32>
    %773 = arith.mulf %772, %701 : vector<8x128xf32>
    %774 = arith.addf %771, %773 : vector<8x128xf32>
    %775 = vector.broadcast %191 : f32 to vector<8x128xf32>
    %776 = arith.mulf %775, %752 : vector<8x128xf32>
    %777 = arith.addf %774, %776 : vector<8x128xf32>
    %cst_372 = arith.constant -3.000000e+01 : f32
    %778 = vector.broadcast %cst_372 : f32 to vector<8x128xf32>
    %779 = arith.maximumf %777, %778 : vector<8x128xf32>
    %cst_373 = arith.constant 0.000000e+00 : f32
    %780 = vector.broadcast %cst_373 : f32 to vector<8x128xf32>
    %781 = arith.subf %780, %779 : vector<8x128xf32>
    %782 = math.exp %781 : vector<8x128xf32>
    %cst_374 = arith.constant 1.000000e+00 : f32
    %783 = vector.broadcast %cst_374 : f32 to vector<8x128xf32>
    %784 = arith.addf %783, %782 : vector<8x128xf32>
    %785 = tpu.reciprocal %784 {approx = true} : vector<8x128xf32> -> vector<8x128xf32>
    %786 = arith.index_cast %194 : i32 to index
    %c0_375 = arith.constant 0 : index
    %787 = vector.load %arg8[%786, %c0_375] : memref<8x128xf32, #tpu.memory_space<vmem>>, vector<8x128xf32>
    tpu.vector_store %arg8[%786, %c0_375], %785 {strides = array<i32>} : memref<8x128xf32, #tpu.memory_space<vmem>>, vector<8x128xf32>,
    %c1_i32 = arith.constant 1 : i32
    return
  }
  func.func @transform_0(%arg0: i32) -> (i32, i32, i32) {
    %c0_i32 = arith.constant 0 : i32
    %c0_i32_0 = arith.constant 0 : i32
    %c0_i32_1 = arith.constant 0 : i32
    return %c0_i32, %arg0, %c0_i32_0 : i32, i32, i32
  }
  func.func @transform_1(%arg0: i32) -> (i32, i32) {
    %c0_i32 = arith.constant 0 : i32
    %c0_i32_0 = arith.constant 0 : i32
    %c0_i32_1 = arith.constant 0 : i32
    return %c0_i32, %c0_i32_0 : i32, i32
  }
  func.func @transform_2(%arg0: i32) -> i32 {
    %c0_i32 = arith.constant 0 : i32
    %c0_i32_0 = arith.constant 0 : i32
    return %c0_i32 : i32
  }
  func.func @transform_3(%arg0: i32) -> (i32, i32) {
    %c0_i32 = arith.constant 0 : i32
    %c0_i32_0 = arith.constant 0 : i32
    %c0_i32_1 = arith.constant 0 : i32
    return %c0_i32, %c0_i32_0 : i32, i32
  }
  func.func @transform_4(%arg0: i32) -> i32 {
    %c0_i32 = arith.constant 0 : i32
    %c0_i32_0 = arith.constant 0 : i32
    return %c0_i32 : i32
  }
  func.func @transform_5(%arg0: i32) -> (i32, i32) {
    %c0_i32 = arith.constant 0 : i32
    %c0_i32_0 = arith.constant 0 : i32
    %c0_i32_1 = arith.constant 0 : i32
    return %c0_i32, %c0_i32_0 : i32, i32
  }
  func.func @transform_6(%arg0: i32) -> i32 {
    %c0_i32 = arith.constant 0 : i32
    %c0_i32_0 = arith.constant 0 : i32
    return %c0_i32 : i32
  }
  func.func @transform_7(%arg0: i32) -> (i32, i32) {
    %c0_i32 = arith.constant 0 : i32
    %c0_i32_0 = arith.constant 0 : i32
    return %arg0, %c0_i32 : i32, i32
  }
}

</mosaic_0001>

<bundles_post_ra>
// kernel: tpu_custom_call.1
= control target key start
LH: loop header
LB: loop body
LE: loop exit
PB: predicated region body
PF: predicated region fallthrough
CT: control target
= control target key end

     0   :  { %13 = vsyncpa [#allocation5], 0  ;;  %s2304_s0 = inlined_call_operand.vmem [shape: f32[2,8,128], index: 0, kind: input, shape index: {}]   ;;  %s2305_s1 = inlined_call_operand.vmem [shape: f32[16,2], index: 1, kind: input, shape index: {}]   ;;  %s2306_s2 = inlined_call_operand.vmem [shape: f32[16], index: 2, kind: input, shape index: {}]   ;;  %s2307_s3 = inlined_call_operand.vmem [shape: f32[8,16], index: 3, kind: input, shape index: {}]   ;;  %s2308_s4 = inlined_call_operand.vmem [shape: f32[8], index: 4, kind: input, shape index: {}]   ;;  %s2309_s5 = inlined_call_operand.vmem [shape: f32[1,8], index: 5, kind: input, shape index: {}]   ;;  %s2310_s6 = inlined_call_operand.<no memory space> [shape: f32[1], index: 6, kind: input, shape index: {}]   ;;  %s2311_s7 = inlined_call_operand.hbm [shape: f32[8,128], index: 7, kind: output, shape index: {}]  }
   0x1   :  { %14 = vsyncpa [#allocation7], 0 }
   0x2   :  { %15 = vsyncpa [#allocation10], 0  ;;  %s37_s26 = sshll.u32 %s2306_s2, 4  ;;  %s38_s26 = int_to_ptr.vmem [resolvable:$true] %s37_s26 }
   0x3   :  { %16 = vsyncpa [#allocation4], 0  ;;  %s57_s29 = sshll.u32 %s2308_s4, 4  ;;  %s1064_s30 = scalar_lea.vmem %s38_s26, 16  ;;  %s58_s29 = int_to_ptr.vmem [resolvable:$true] %s57_s29 }
   0x4   :  { %p1065_p0 = scmp.ne.s32.totalorder %s38_s26, %s1064_s30  ;;  %p1069_p1 = scmp.lt.s32.totalorder %s38_s26, %s38_s26 }
   0x5   :  { %p1070_p2 = scmp.lt.s32.totalorder %s1064_s30, %s1064_s30 }
   0x7   :  { %p1071_p3 = por %p1070_p2, %p1069_p1 }
   0x9   :  { %p1072_p4 = pnand %p1071_p3, %p1065_p0 }
   0xb   :  { %1075 = shalt.err (!%p1072_p4)
}
   0xc   :  { %s1154_s8 = smov [#allocation6]   ;;  %s1076_s9 = scalar_lea.vmem %s58_s29, 16 }
   0xd   :  { %40 = dma.vmem_to_smem %s38_s26, 16, %s1154_s8, [#allocation7]  }
   0xe   :  { %p1077_p5 = scmp.ne.s32.totalorder %s58_s29, %s1076_s9  ;;  %p1081_p6 = scmp.lt.s32.totalorder %s58_s29, %s58_s29 }
   0xf   :  { %p1082_p7 = scmp.lt.s32.totalorder %s1076_s9, %s1076_s9 }
  0x11   :  { %p1083_p8 = por %p1082_p7, %p1081_p6 }
  0x13   :  { %p1084_p9 = pnand %p1083_p8, %p1077_p5 }
  0x15   :  { %1087 = shalt.err (!%p1084_p9)
}
  0x16   :  { %s1155_s2 = smov [#allocation9]   ;;  %s24_s11 = sshll.u32 %s2305_s1, 4  ;;  %s25_s11 = int_to_ptr.vmem [resolvable:$true] %s24_s11 }
  0x17   :  { %60 = dma.vmem_to_smem %s58_s29, 16, %s1155_s2, [#allocation10]  }
  0x18   :  { %s47_s14 = sshll.u32 %s2307_s3, 4  ;;  %s1088_s15 = scalar_lea.vmem %s25_s11, 256  ;;  %s48_s14 = int_to_ptr.vmem [resolvable:$true] %s47_s14 }
  0x19   :  { %p1089_p10 = scmp.ne.s32.totalorder %s25_s11, %s1088_s15  ;;  %p1093_p11 = scmp.lt.s32.totalorder %s25_s11, %s25_s11 }
  0x1a   :  { %p1094_p12 = scmp.lt.s32.totalorder %s1088_s15, %s1088_s15 }
  0x1c   :  { %p1095_p13 = por %p1094_p12, %p1093_p11 }
  0x1e   :  { %p1096_p0 = pnand %p1095_p13, %p1089_p10 }
  0x20   :  { %1099 = shalt.err (!%p1096_p0)
}
  0x21   :  { %s1156_s16 = smov [#allocation3]   ;;  %s1157_s17 = smov 128  }
  0x22   :  { %s1158_s18 = smov 8   ;;  %s1100_s19 = scalar_lea.vmem %s48_s14, 128 }
  0x23   :  { %30 = dma.vmem_to_smem %s25_s11, 256, %s1156_s16, [#allocation5], %s1157_s17, %s1157_s17, %s1158_s18  }
  0x24   :  { %p1101_p1 = scmp.ne.s32.totalorder %s48_s14, %s1100_s19  ;;  %p1105_p2 = scmp.lt.s32.totalorder %s48_s14, %s48_s14 }
  0x25   :  { %p1106_p3 = scmp.lt.s32.totalorder %s1100_s19, %s1100_s19 }
  0x27   :  { %p1107_p4 = por %p1106_p3, %p1105_p2 }
  0x29   :  { %p1108_p5 = pnand %p1107_p4, %p1101_p1 }
  0x2b   :  { %1111 = shalt.err (!%p1108_p5)
}
  0x2c   :  { %s1159_s1 = smov [#allocation8]   ;;  %s67_s21 = sshll.u32 %s2309_s5, 4  ;;  %s68_s21 = int_to_ptr.vmem [resolvable:$true] %s67_s21 }
  0x2d   :  { %50 = dma.vmem_to_smem %s48_s14, 128, %s1159_s1, [#allocation7]  }
  0x2e   :  { %s1112_s22 = scalar_lea.vmem %s68_s21, 16  ;;  %p1117_p7 = scmp.lt.s32.totalorder %s68_s21, %s68_s21 }
  0x2f   :  { %p1113_p6 = scmp.ne.s32.totalorder %s68_s21, %s1112_s22  ;;  %p1118_p8 = scmp.lt.s32.totalorder %s1112_s22, %s1112_s22 }
  0x31   :  { %p1119_p9 = por %p1118_p8, %p1117_p7 }
  0x33   :  { %p1120_p10 = pnand %p1119_p9, %p1113_p6 }
  0x35   :  { %1123 = shalt.err (!%p1120_p10)
}
  0x36   :  { %s1160_s23 = smov [#allocation11]  }
  0x37   :  { %70 = dma.vmem_to_smem %s68_s21, 16, %s1160_s23, [#allocation10]  }
  0x38   :  { %1146 = dma.done.wait [#allocation5], 256  }
  0x39   :  { %1147 = vsyncadd [#allocation5], 4294967040 }
  0x3a   :  { %1148 = dma.done.wait [#allocation7], 144  }
  0x3b   :  { %1149 = vsyncadd [#allocation7], 4294967152 }
  0x3c   :  { %1150 = dma.done.wait [#allocation10], 32  }
  0x3d   :  { %1151 = vsyncadd [#allocation10], 4294967264 }
  0x3e   :  { %88 = sfence }
  0x3f   :  { %s89_s24 = sld [smem:[#allocation3]]  ;;  %s864_s25 = sld [smem:[#allocation3 + $0x1]]  ;;  %v1244_v0 = vld [vmem:[%s2304_s0] sm:$0xff]  ;;  %v1249_v1 = vld [vmem:[%s2304_s0 + $0x8] sm:$0xff] }
  0x40   :  { %s865_s5 = sld [smem:[#allocation3 + $0x80]]  ;;  %s866_s26 = sld [smem:[#allocation3 + $0x81]] }
  0x41   :  { %s1217_s27 = sld [smem:[#allocation3 + $0x100]]  ;;  %s1219_s28 = sld [smem:[#allocation3 + $0x101]] }
  0x42   :  { %s1221_s29 = sld [smem:[#allocation3 + $0x180]]  ;;  %s1223_s30 = sld [smem:[#allocation3 + $0x181]] }
  0x43   :  { %s1225_s8 = sld [smem:[#allocation3 + $0x200]]  ;;  %s1227_s9 = sld [smem:[#allocation3 + $0x201]] }
  0x44   :  { %s1229_s2 = sld [smem:[#allocation3 + $0x280]]  ;;  %s1231_s4 = sld [smem:[#allocation3 + $0x281]] }
  0x45   :  { %s1233_s10 = sld [smem:[#allocation3 + $0x300]]  ;;  %s1235_s11 = sld [smem:[#allocation3 + $0x301]]  ;;  %v286_v2 = vstv %s89_s24  ;;  %v288_v3 = vstv %s864_s25 }
  0x46   :  { %s1237_s12 = sld [smem:[#allocation3 + $0x380]]  ;;  %s1239_s13 = sld [smem:[#allocation3 + $0x381]]  ;;  %v294_v4 = vstv %s865_s5  ;;  %v296_v5 = vstv %s866_s26  ;;  %v287_v8 = vmul.f32 %v286_v2, %v1244_v0  ;;  %v289_v9 = vmul.f32 %v1249_v1, %v288_v3 }
  0x47   :  { %s1251_s18 = sld [smem:[#allocation3 + $0x400]]  ;;  %s1253_s19 = sld [smem:[#allocation3 + $0x401]]  ;;  %v302_v6 = vstv %s1217_s27  ;;  %v304_v7 = vstv %s1219_s28  ;;  %v295_v10 = vmul.f32 %v294_v4, %v1244_v0  ;;  %v297_v11 = vmul.f32 %v1249_v1, %v296_v5 }
  0x48   :  { %s1255_s1 = sld [smem:[#allocation3 + $0x480]]  ;;  %s1257_s3 = sld [smem:[#allocation3 + $0x481]]  ;;  %v310_v12 = vstv %s1221_s29  ;;  %v312_v13 = vstv %s1223_s30  ;;  %v303_v16 = vmul.f32 %v302_v6, %v1244_v0  ;;  %v305_v17 = vmul.f32 %v1249_v1, %v304_v7 }
  0x49   :  { %s1261_s0 = sld [smem:[#allocation3 + $0x500]]  ;;  %s1267_s20 = sld [smem:[#allocation3 + $0x501]]  ;;  %v318_v14 = vstv %s1225_s8  ;;  %v320_v15 = vstv %s1227_s9  ;;  %v311_v24 = vmul.f32 %v310_v12, %v1244_v0  ;;  %v313_v25 = vmul.f32 %v1249_v1, %v312_v13 }
  0x4a   :  { %v326_v18 = vstv %s1229_s2  ;;  %v328_v19 = vstv %s1231_s4  ;;  %s1277_s21 = sld [smem:[#allocation3 + $0x580]]  ;;  %s1279_s22 = sld [smem:[#allocation3 + $0x581]]  ;;  %v319_v26 = vmul.f32 %v318_v14, %v1244_v0  ;;  %v321_v27 = vmul.f32 %v1249_v1, %v320_v15 }
  0x4b   :  { %v334_v20 = vstv %s1233_s10  ;;  %v336_v21 = vstv %s1235_s11  ;;  %s1285_s23 = sld [smem:[#allocation3 + $0x600]]  ;;  %s1287_s24 = sld [smem:[#allocation3 + $0x601]]  ;;  %v327_v28 = vmul.f32 %v326_v18, %v1244_v0  ;;  %v329_v29 = vmul.f32 %v1249_v1, %v328_v19 }
  0x4c   :  { %v342_v22 = vstv %s1237_s12  ;;  %v344_v23 = vstv %s1239_s13  ;;  %s1293_s25 = sld [smem:[#allocation6]]  ;;  %s1295_s5 = sld [smem:[#allocation6 + $0x1]]  ;;  %v335_v32 = vmul.f32 %v334_v20, %v1244_v0  ;;  %v337_v33 = vmul.f32 %v1249_v1, %v336_v21 }
  0x4d   :  { %v350_v30 = vstv %s1251_s18  ;;  %v352_v31 = vstv %s1253_s19  ;;  %s1301_s26 = sld [smem:[#allocation6 + $0x2]]  ;;  %s1303_s27 = sld [smem:[#allocation6 + $0x3]]  ;;  %v343_v34 = vmul.f32 %v342_v22, %v1244_v0  ;;  %v345_v35 = vmul.f32 %v1249_v1, %v344_v23 }
  0x4e   :  { %s1309_s28 = sld [smem:[#allocation6 + $0x4]]  ;;  %s1311_s29 = sld [smem:[#allocation6 + $0x5]]  ;;  %v351_v36 = vmul.f32 %v350_v30, %v1244_v0  ;;  %v353_v37 = vmul.f32 %v1249_v1, %v352_v31  ;;  %v358_v38 = vstv %s1255_s1  ;;  %v360_v39 = vstv %s1257_s3 }
  0x4f   :  { %s1317_s30 = sld [smem:[#allocation3 + $0x680]]  ;;  %v290_v40 = vadd.f32 %v289_v9, %v287_v8  ;;  %v298_v41 = vadd.f32 %v297_v11, %v295_v10  ;;  %v306_v42 = vadd.f32 %v305_v17, %v303_v16  ;;  %v366_v43 = vstv %s1261_s0  ;;  %s1320_s8 = sld [smem:[#allocation6 + $0x6]] }
  0x50   :  { %s1322_s9 = sld [smem:[#allocation6 + $0x7]]  ;;  %v314_v44 = vadd.f32 %v313_v25, %v311_v24  ;;  %v322_v45 = vadd.f32 %v321_v27, %v319_v26  ;;  %v330_v46 = vadd.f32 %v329_v29, %v327_v28  ;;  %v368_v47 = vstv %s1267_s20  ;;  %s1325_s2 = sld [smem:[#allocation6 + $0x8]] }
  0x51   :  { %s1327_s4 = sld [smem:[#allocation6 + $0x9]]  ;;  %v338_v48 = vadd.f32 %v337_v33, %v335_v32  ;;  %v346_v49 = vadd.f32 %v345_v35, %v343_v34  ;;  %v359_v50 = vmul.f32 %v358_v38, %v1244_v0  ;;  %v361_v51 = vmul.f32 %v1249_v1, %v360_v39  ;;  %s1334_s10 = sld [smem:[#allocation6 + $0xa]] }
  0x52   :  { %v291_v52 = vstv %s1293_s25  ;;  %v299_v53 = vstv %s1295_s5  ;;  %v354_v54 = vadd.f32 %v353_v37, %v351_v36  ;;  %v367_v55 = vmul.f32 %v366_v43, %v1244_v0  ;;  %s1340_s11 = sld [smem:[#allocation3 + $0x681]]  ;;  %s1346_s12 = sld [smem:[#allocation3 + $0x700]] }
  0x53   :  { %v307_v56 = vstv %s1301_s26  ;;  %v315_v57 = vstv %s1303_s27  ;;  %v369_v58 = vmul.f32 %v1249_v1, %v368_v47  ;;  %v374_v59 = vstv %s1277_s21  ;;  %s1348_s13 = sld [smem:[#allocation3 + $0x701]]  ;;  %s1351_s14 = sld [smem:[#allocation6 + $0xb]] }
  0x54   :  { %v323_v60 = vstv %s1309_s28  ;;  %v331_v61 = vstv %s1311_s29  ;;  %v376_v62 = vstv %s1279_s22  ;;  %v382_v63 = vstv %s1285_s23  ;;  %s1353_s15 = sld [smem:[#allocation6 + $0xc]]  ;;  %s1355_s16 = sld [smem:[#allocation3 + $0x780]] }
  0x55   :  { %v292_v2 = vadd.f32 %v291_v52, %v290_v40  ;;  %v300_v3 = vadd.f32 %v299_v53, %v298_v41  ;;  %v362_v4 = vadd.f32 %v361_v51, %v359_v50  ;;  %v384_v5 = vstv %s1287_s24  ;;  %s1357_s17 = sld [smem:[#allocation3 + $0x781]]  ;;  %s1362_s18 = sld [smem:[#allocation6 + $0xd]] }
  0x56   :  { %v308_v6 = vadd.f32 %v307_v56, %v306_v42  ;;  %v316_v7 = vadd.f32 %v315_v57, %v314_v44  ;;  %v324_v8 = vadd.f32 %v323_v60, %v322_v45  ;;  %v332_v9 = vadd.f32 %v331_v61, %v330_v46  ;;  %s1368_s19 = sld [smem:[#allocation6 + $0xe]]  ;;  %s1376_s1 = sld [smem:[#allocation6 + $0xf]] }
  0x57   :  { %v370_v10 = vadd.f32 %v369_v58, %v367_v55  ;;  %v375_v11 = vmul.f32 %v374_v59, %v1244_v0  ;;  %v377_v12 = vmul.f32 %v1249_v1, %v376_v62  ;;  %v383_v13 = vmul.f32 %v382_v63, %v1244_v0  ;;  %s1386_s3 = sld [smem:[#allocation8]]  ;;  %s1388_s0 = sld [smem:[#allocation8 + $0x1]] }
  0x58   :  { %v339_v14 = vstv %s1320_s8  ;;  %v347_v15 = vstv %s1322_s9  ;;  %v385_v16 = vmul.f32 %v1249_v1, %v384_v5  ;;  %v390_v17 = vstv %s1317_s30  ;;  %s1392_s20 = sld [smem:[#allocation8 + $0x2]]  ;;  %s1394_s21 = sld [smem:[#allocation8 + $0x3]] }
  0x59   :  { %v1370_v18 = vmax.f32 %v292_v2, 0.0  ;;  %v1372_v19 = vmax.f32 %v300_v3, 0.0  ;;  %v355_v20 = vstv %s1325_s2  ;;  %v363_v21 = vstv %s1327_s4  ;;  %s1397_s22 = sld [smem:[#allocation8 + $0x4]]  ;;  %s1399_s23 = sld [smem:[#allocation8 + $0x5]] }
  0x5a   :  { %v1378_v22 = vmax.f32 %v308_v6, 0.0  ;;  %v1380_v23 = vmax.f32 %v316_v7, 0.0  ;;  %v1382_v24 = vmax.f32 %v324_v8, 0.0  ;;  %v1384_v25 = vmax.f32 %v332_v9, 0.0  ;;  %s1404_s24 = sld [smem:[#allocation8 + $0x6]]  ;;  %s1406_s25 = sld [smem:[#allocation8 + $0x7]] }
  0x5b   :  { %v340_v26 = vadd.f32 %v339_v14, %v338_v48  ;;  %v348_v27 = vadd.f32 %v347_v15, %v346_v49  ;;  %v371_v28 = vstv %s1334_s10  ;;  %v391_v29 = vmul.f32 %v390_v17, %v1244_v0  ;;  %s1412_s5 = sld [smem:[#allocation8 + $0x8]]  ;;  %s1414_s26 = sld [smem:[#allocation8 + $0x9]] }
  0x5c   :  { %2328 = vst [vmem:[#allocation17_spill] sm:$0xff] %v1380_v23  ;;  %2329 = vst [vmem:[#allocation18_spill] sm:$0xff] %v1382_v24  ;;  %v356_v30 = vadd.f32 %v355_v20, %v354_v54  ;;  %v364_v31 = vadd.f32 %v363_v21, %v362_v4  ;;  %v378_v32 = vadd.f32 %v377_v12, %v375_v11  ;;  %v392_v33 = vstv %s1340_s11  ;;  %s1418_s27 = sld [smem:[#allocation8 + $0xa]]  ;;  %s1420_s28 = sld [smem:[#allocation8 + $0xb]] }
  0x5d   :  { %2330 = vst [vmem:[#allocation19_spill] sm:$0xff] %v1384_v25  ;;  %v386_v34 = vadd.f32 %v385_v16, %v383_v13  ;;  %v393_v35 = vmul.f32 %v1249_v1, %v392_v33  ;;  %v398_v36 = vstv %s1346_s12  ;;  %v400_v37 = vstv %s1348_s13  ;;  %s1425_s29 = sld [smem:[#allocation8 + $0xc]]  ;;  %s1427_s30 = sld [smem:[#allocation8 + $0xd]] }
  0x5e   :  { %v379_v38 = vstv %s1351_s14  ;;  %v387_v39 = vstv %s1353_s15  ;;  %v399_v40 = vmul.f32 %v398_v36, %v1244_v0  ;;  %v401_v41 = vmul.f32 %v1249_v1, %v400_v37  ;;  %s1432_s8 = sld [smem:[#allocation8 + $0xe]]  ;;  %s1434_s9 = sld [smem:[#allocation8 + $0xf]] }
  0x5f   :  { %v372_v42 = vadd.f32 %v371_v28, %v370_v10  ;;  %v394_v43 = vadd.f32 %v393_v35, %v391_v29  ;;  %v406_v44 = vstv %s1355_s16  ;;  %v408_v45 = vstv %s1357_s17  ;;  %s1440_s2 = sld [smem:[#allocation8 + $0x80]]  ;;  %s1442_s4 = sld [smem:[#allocation8 + $0x81]] }
  0x60   :  { %v395_v46 = vstv %s1362_s18  ;;  %v402_v47 = vadd.f32 %v401_v41, %v399_v40  ;;  %v407_v48 = vmul.f32 %v406_v44, %v1244_v0  ;;  %v409_v49 = vmul.f32 %v1249_v1, %v408_v45  ;;  %s1447_s10 = sld [smem:[#allocation8 + $0x82]]  ;;  %s1449_s11 = sld [smem:[#allocation8 + $0x83]] }
  0x61   :  { %v1429_v50 = vmax.f32 %v340_v26, 0.0  ;;  %v380_v51 = vadd.f32 %v379_v38, %v378_v32  ;;  %v388_v52 = vadd.f32 %v387_v39, %v386_v34  ;;  %v403_v53 = vstv %s1368_s19  ;;  %s1456_s12 = sld [smem:[#allocation8 + $0x84]]  ;;  %s1458_s13 = sld [smem:[#allocation8 + $0x85]] }
  0x62   :  { %v1436_v0 = vmax.f32 %v348_v27, 0.0  ;;  %v1438_v54 = vmax.f32 %v356_v30, 0.0  ;;  %v410_v1 = vadd.f32 %v409_v49, %v407_v48  ;;  %v396_v55 = vadd.f32 %v395_v46, %v394_v43  ;;  %s1466_s14 = sld [smem:[#allocation8 + $0x86]]  ;;  %s1468_s15 = sld [smem:[#allocation8 + $0x87]] }
  0x63   :  { %2331 = vst [vmem:[#allocation20_spill] sm:$0xff] %v1429_v50  ;;  %v411_v56 = vstv %s1376_s1  ;;  %v414_v57 = vstv %s1386_s3  ;;  %v418_v58 = vstv %s1388_s0  ;;  %v1451_v59 = vmax.f32 %v364_v31, 0.0  ;;  %s1477_s16 = sld [smem:[#allocation8 + $0x88]]  ;;  %s1479_s17 = sld [smem:[#allocation8 + $0x89]] }
  0x64   :  { %2332 = vst [vmem:[#allocation21_spill] sm:$0xff] %v1436_v0  ;;  %2333 = vst [vmem:[#allocation22_spill] sm:$0xff] %v1438_v54  ;;  %v1453_v60 = vmax.f32 %v372_v42, 0.0  ;;  %v404_v61 = vadd.f32 %v403_v53, %v402_v47  ;;  %v421_v62 = vstv %s1392_s20  ;;  %v1460_v63 = vmax.f32 %v380_v51, 0.0  ;;  %s1488_s18 = sld [smem:[#allocation8 + $0x8a]]  ;;  %s1490_s19 = sld [smem:[#allocation8 + $0x8b]] }
  0x65   :  { %2334 = vst [vmem:[#allocation23_spill] sm:$0xff] %v1451_v59  ;;  %v1462_v2 = vmax.f32 %v388_v52, 0.0  ;;  %v424_v3 = vstv %s1394_s21  ;;  %v427_v4 = vstv %s1397_s22  ;;  %v412_v5 = vadd.f32 %v411_v56, %v410_v1  ;;  %s1501_s1 = sld [smem:[#allocation8 + $0x8c]]  ;;  %s1503_s3 = sld [smem:[#allocation8 + $0x8d]] }
  0x66   :  { %2335 = vst [vmem:[#allocation24_spill] sm:$0xff] %v1453_v60  ;;  %v1471_v6 = vmul.f32 %v414_v57, %v1370_v18  ;;  %v1474_v7 = vmul.f32 %v418_v58, %v1372_v19  ;;  %v430_v8 = vstv %s1399_s23  ;;  %v1481_v9 = vmax.f32 %v396_v55, 0.0  ;;  %s1511_s0 = sld [smem:[#allocation8 + $0x8e]]  ;;  %s1513_s20 = sld [smem:[#allocation8 + $0x8f]] }
  0x67   :  { %2336 = vst [vmem:[#allocation25_spill] sm:$0xff] %v1462_v2  ;;  %v1484_v10 = vmul.f32 %v421_v62, %v1378_v22  ;;  %v433_v11 = vstv %s1404_s24  ;;  %v436_v12 = vstv %s1406_s25  ;;  %v1492_v13 = vmax.f32 %v404_v61, 0.0  ;;  %s1524_s21 = sld [smem:[#allocation8 + $0x100]]  ;;  %s1526_s22 = sld [smem:[#allocation8 + $0x101]] }
  0x68   :  { %2337 = vst [vmem:[#allocation26_spill] sm:$0xff] %v1481_v9  ;;  %v1495_v14 = vmul.f32 %v424_v3, %v1380_v23  ;;  %v1498_v15 = vmul.f32 %v427_v4, %v1382_v24  ;;  %v439_v16 = vstv %s1412_s5  ;;  %v1506_v17 = vmul.f32 %v430_v8, %v1384_v25  ;;  %s1534_s23 = sld [smem:[#allocation8 + $0x102]]  ;;  %s1536_s24 = sld [smem:[#allocation8 + $0x103]] }
  0x69   :  { %2338 = vst [vmem:[#allocation27_spill] sm:$0xff] %v1492_v13  ;;  %v442_v20 = vstv %s1414_s26  ;;  %v445_v21 = vstv %s1418_s27  ;;  %v448_v26 = vstv %s1420_s28  ;;  %v1515_v27 = vmax.f32 %v412_v5, 0.0  ;;  %s1548_s25 = sld [smem:[#allocation8 + $0x104]]  ;;  %s1550_s5 = sld [smem:[#allocation8 + $0x105]] }
  0x6a   :  { %v1518_v28 = vmul.f32 %v433_v11, %v1429_v50  ;;  %v1521_v29 = vmul.f32 %v436_v12, %v1436_v0  ;;  %v451_v30 = vstv %s1425_s29  ;;  %v1529_v31 = vmul.f32 %v439_v16, %v1438_v54  ;;  %s1558_s26 = sld [smem:[#allocation8 + $0x106]]  ;;  %s1560_s27 = sld [smem:[#allocation8 + $0x107]] }
  0x6b   :  { %2339 = vst [vmem:[#allocation28_spill] sm:$0xff] %v1515_v27  ;;  %v454_v32 = vstv %s1427_s30  ;;  %v457_v33 = vstv %s1432_s8  ;;  %v460_v34 = vstv %s1434_s9  ;;  %v1539_v35 = vmul.f32 %v442_v20, %v1451_v59  ;;  %s1572_s28 = sld [smem:[#allocation8 + $0x108]]  ;;  %s1574_s29 = sld [smem:[#allocation8 + $0x109]] }
  0x6c   :  { %2340 = vst [vmem:[#allocation29_spill] sm:$0xff] %v1518_v28  ;;  %2341 = vst [vmem:[#allocation30_spill] sm:$0xff] %v1521_v29  ;;  %v1542_v36 = vmul.f32 %v445_v21, %v1453_v60  ;;  %v1545_v37 = vmul.f32 %v448_v26, %v1460_v63  ;;  %v464_v38 = vstv %s1440_s2  ;;  %v1553_v39 = vmul.f32 %v451_v30, %v1462_v2  ;;  %s1582_s30 = sld [smem:[#allocation8 + $0x10a]]  ;;  %s1584_s8 = sld [smem:[#allocation8 + $0x10b]] }
  0x6d   :  { %2342 = vst [vmem:[#allocation31_spill] sm:$0xff] %v1529_v31  ;;  %2343 = vst [vmem:[#allocation32_spill] sm:$0xff] %v1539_v35  ;;  %v468_v40 = vstv %s1442_s4  ;;  %v471_v41 = vstv %s1447_s10  ;;  %v474_v42 = vstv %s1449_s11  ;;  %v1563_v43 = vmul.f32 %v454_v32, %v1481_v9  ;;  %s1596_s9 = sld [smem:[#allocation8 + $0x10c]]  ;;  %s1598_s2 = sld [smem:[#allocation8 + $0x10d]] }
  0x6e   :  { %2344 = vst [vmem:[#allocation33_spill] sm:$0xff] %v1542_v36  ;;  %2345 = vst [vmem:[#allocation34_spill] sm:$0xff] %v1545_v37  ;;  %v1566_v44 = vmul.f32 %v457_v33, %v1492_v13  ;;  %v1569_v45 = vmul.f32 %v460_v34, %v1515_v27  ;;  %v477_v46 = vstv %s1456_s12  ;;  %v1577_v47 = vmul.f32 %v464_v38, %v1370_v18  ;;  %s1606_s4 = sld [smem:[#allocation8 + $0x10e]]  ;;  %s1608_s10 = sld [smem:[#allocation8 + $0x10f]] }
  0x6f   :  { %2346 = vst [vmem:[#allocation35_spill] sm:$0xff] %v1553_v39  ;;  %2347 = vst [vmem:[#allocation36_spill] sm:$0xff] %v1563_v43  ;;  %v480_v48 = vstv %s1458_s13  ;;  %v483_v49 = vstv %s1466_s14  ;;  %v486_v51 = vstv %s1468_s15  ;;  %v1587_v52 = vmul.f32 %v468_v40, %v1372_v19  ;;  %s1620_s11 = sld [smem:[#allocation8 + $0x180]]  ;;  %s1622_s12 = sld [smem:[#allocation8 + $0x181]] }
  0x70   :  { %2348 = vst [vmem:[#allocation37_spill] sm:$0xff] %v1566_v44  ;;  %2349 = vst [vmem:[#allocation38_spill] sm:$0xff] %v1569_v45  ;;  %v1590_v53 = vmul.f32 %v471_v41, %v1378_v22  ;;  %v1593_v1 = vmul.f32 %v474_v42, %v1380_v23  ;;  %v489_v55 = vstv %s1477_s16  ;;  %v1601_v56 = vmul.f32 %v477_v46, %v1382_v24  ;;  %s1630_s13 = sld [smem:[#allocation8 + $0x182]]  ;;  %s1632_s14 = sld [smem:[#allocation8 + $0x183]] }
  0x71   :  { %v492_v57 = vstv %s1479_s17  ;;  %v495_v58 = vstv %s1488_s18  ;;  %v498_v61 = vstv %s1490_s19  ;;  %v1611_v62 = vmul.f32 %v480_v48, %v1384_v25  ;;  %s1644_s15 = sld [smem:[#allocation8 + $0x184]]  ;;  %s1646_s16 = sld [smem:[#allocation8 + $0x185]] }
  0x72   :  { %v1614_v3 = vmul.f32 %v483_v49, %v1429_v50  ;;  %v1617_v4 = vmul.f32 %v486_v51, %v1436_v0  ;;  %v501_v5 = vstv %s1501_s1  ;;  %v1625_v8 = vmul.f32 %v489_v55, %v1438_v54  ;;  %s1654_s17 = sld [smem:[#allocation8 + $0x186]]  ;;  %s1656_s18 = sld [smem:[#allocation8 + $0x187]] }
  0x73   :  { %v504_v11 = vstv %s1503_s3  ;;  %v507_v12 = vstv %s1511_s0  ;;  %v510_v16 = vstv %s1513_s20  ;;  %v1635_v20 = vmul.f32 %v492_v57, %v1451_v59  ;;  %s1668_s19 = sld [smem:[#allocation8 + $0x188]]  ;;  %s1670_s1 = sld [smem:[#allocation8 + $0x189]] }
  0x74   :  { %2350 = vst [vmem:[#allocation39_spill] sm:$0xff] %v1614_v3  ;;  %2351 = vst [vmem:[#allocation40_spill] sm:$0xff] %v1617_v4  ;;  %v1638_v21 = vmul.f32 %v495_v58, %v1453_v60  ;;  %v1641_v26 = vmul.f32 %v498_v61, %v1460_v63  ;;  %v514_v30 = vstv %s1524_s21  ;;  %v1649_v32 = vmul.f32 %v501_v5, %v1462_v2  ;;  %s1678_s3 = sld [smem:[#allocation8 + $0x18a]]  ;;  %s1680_s0 = sld [smem:[#allocation8 + $0x18b]] }
  0x75   :  { %2352 = vst [vmem:[#allocation41_spill] sm:$0xff] %v1625_v8  ;;  %2353 = vst [vmem:[#allocation42_spill] sm:$0xff] %v1635_v20  ;;  %v518_v33 = vstv %s1526_s22  ;;  %v521_v34 = vstv %s1534_s23  ;;  %v524_v38 = vstv %s1536_s24  ;;  %v1659_v40 = vmul.f32 %v504_v11, %v1481_v9  ;;  %s1692_s20 = sld [smem:[#allocation8 + $0x18c]]  ;;  %s1694_s21 = sld [smem:[#allocation8 + $0x18d]] }
  0x76   :  { %2354 = vst [vmem:[#allocation43_spill] sm:$0xff] %v1638_v21  ;;  %2355 = vst [vmem:[#allocation44_spill] sm:$0xff] %v1641_v26  ;;  %v1662_v41 = vmul.f32 %v507_v12, %v1492_v13  ;;  %v1665_v42 = vmul.f32 %v510_v16, %v1515_v27  ;;  %v527_v46 = vstv %s1548_s25  ;;  %v1673_v48 = vmul.f32 %v514_v30, %v1370_v18  ;;  %s1702_s22 = sld [smem:[#allocation8 + $0x18e]]  ;;  %s1704_s23 = sld [smem:[#allocation8 + $0x18f]] }
  0x77   :  { %2356 = vst [vmem:[#allocation45_spill] sm:$0xff] %v1649_v32  ;;  %2357 = vst [vmem:[#allocation46_spill] sm:$0xff] %v1659_v40  ;;  %v530_v49 = vstv %s1550_s5  ;;  %v533_v51 = vstv %s1558_s26  ;;  %v536_v55 = vstv %s1560_s27  ;;  %v1683_v57 = vmul.f32 %v518_v33, %v1372_v19  ;;  %s1716_s24 = sld [smem:[#allocation8 + $0x200]]  ;;  %s1718_s25 = sld [smem:[#allocation8 + $0x201]] }
  0x78   :  { %2358 = vst [vmem:[#allocation47_spill] sm:$0xff] %v1662_v41  ;;  %2359 = vst [vmem:[#allocation48_spill] sm:$0xff] %v1665_v42  ;;  %v1686_v58 = vmul.f32 %v521_v34, %v1378_v22  ;;  %v1689_v61 = vmul.f32 %v524_v38, %v1380_v23  ;;  %v539_v5 = vstv %s1572_s28  ;;  %v1697_v11 = vmul.f32 %v527_v46, %v1382_v24  ;;  %s1726_s5 = sld [smem:[#allocation8 + $0x202]]  ;;  %s1728_s26 = sld [smem:[#allocation8 + $0x203]] }
  0x79   :  { %v542_v12 = vstv %s1574_s29  ;;  %v545_v16 = vstv %s1582_s30  ;;  %v548_v30 = vstv %s1584_s8  ;;  %v1707_v33 = vmul.f32 %v530_v49, %v1384_v25  ;;  %s1740_s27 = sld [smem:[#allocation8 + $0x204]]  ;;  %s1742_s28 = sld [smem:[#allocation8 + $0x205]] }
  0x7a   :  { %v1710_v34 = vmul.f32 %v533_v51, %v1429_v50  ;;  %v1713_v38 = vmul.f32 %v536_v55, %v1436_v0  ;;  %v551_v42 = vstv %s1596_s9  ;;  %v1721_v46 = vmul.f32 %v539_v5, %v1438_v54  ;;  %s1750_s29 = sld [smem:[#allocation8 + $0x206]]  ;;  %s1752_s30 = sld [smem:[#allocation8 + $0x207]] }
  0x7b   :  { %v554_v45 = vstv %s1598_s2  ;;  %v557_v49 = vstv %s1606_s4  ;;  %v560_v41 = vstv %s1608_s10  ;;  %v1731_v51 = vmul.f32 %v542_v12, %v1451_v59  ;;  %s1764_s8 = sld [smem:[#allocation8 + $0x208]]  ;;  %s1766_s9 = sld [smem:[#allocation8 + $0x209]] }
  0x7c   :  { %2360 = vst [vmem:[#allocation49_spill] sm:$0xff] %v1710_v34  ;;  %2361 = vst [vmem:[#allocation50_spill] sm:$0xff] %v1713_v38  ;;  %v1734_v55 = vmul.f32 %v545_v16, %v1453_v60  ;;  %v1737_v44 = vmul.f32 %v548_v30, %v1460_v63  ;;  %v564_v40 = vstv %s1620_s11  ;;  %v1745_v5 = vmul.f32 %v551_v42, %v1462_v2  ;;  %s1774_s2 = sld [smem:[#allocation8 + $0x20a]]  ;;  %s1776_s4 = sld [smem:[#allocation8 + $0x20b]] }
  0x7d   :  { %2362 = vst [vmem:[#allocation51_spill] sm:$0xff] %v1721_v46  ;;  %2363 = vst [vmem:[#allocation52_spill] sm:$0xff] %v1731_v51  ;;  %v568_v43 = vstv %s1622_s12  ;;  %v571_v12 = vstv %s1630_s13  ;;  %v574_v32 = vstv %s1632_s14  ;;  %v1755_v16 = vmul.f32 %v554_v45, %v1481_v9  ;;  %s1788_s10 = sld [smem:[#allocation8 + $0x20c]]  ;;  %s1790_s11 = sld [smem:[#allocation8 + $0x20d]] }
  0x7e   :  { %2364 = vst [vmem:[#allocation53_spill] sm:$0xff] %v1734_v55  ;;  %2365 = vst [vmem:[#allocation54_spill] sm:$0xff] %v1737_v44  ;;  %v1758_v30 = vmul.f32 %v557_v49, %v1492_v13  ;;  %v1761_v39 = vmul.f32 %v560_v41, %v1515_v27  ;;  %v577_v44 = vstv %s1644_s15  ;;  %v1769_v42 = vmul.f32 %v564_v40, %v1370_v18  ;;  %s1798_s12 = sld [smem:[#allocation8 + $0x20e]]  ;;  %s1800_s13 = sld [smem:[#allocation8 + $0x20f]] }
  0x7f   :  { %2366 = vst [vmem:[#allocation55_spill] sm:$0xff] %v1745_v5  ;;  %2367 = vst [vmem:[#allocation56_spill] sm:$0xff] %v1755_v16  ;;  %v580_v5 = vstv %s1646_s16  ;;  %v583_v45 = vstv %s1654_s17  ;;  %v586_v16 = vstv %s1656_s18  ;;  %v1779_v41 = vmul.f32 %v568_v43, %v1372_v19  ;;  %s1812_s14 = sld [smem:[#allocation8 + $0x280]]  ;;  %s1814_s15 = sld [smem:[#allocation8 + $0x281]] }
  0x80   :  { %2368 = vst [vmem:[#allocation57_spill] sm:$0xff] %v1758_v30  ;;  %2369 = vst [vmem:[#allocation58_spill] sm:$0xff] %v1761_v39  ;;  %v1782_v49 = vmul.f32 %v571_v12, %v1378_v22  ;;  %v1785_v39 = vmul.f32 %v574_v32, %v1380_v23  ;;  %v589_v27 = vstv %s1668_s19  ;;  %v1793_v40 = vmul.f32 %v577_v44, %v1382_v24  ;;  %s1822_s16 = sld [smem:[#allocation8 + $0x282]]  ;;  %s1824_s17 = sld [smem:[#allocation8 + $0x283]] }
  0x81   :  { %v592_v30 = vstv %s1670_s1  ;;  %v595_v43 = vstv %s1678_s3  ;;  %v598_v26 = vstv %s1680_s0  ;;  %v1803_v32 = vmul.f32 %v580_v5, %v1384_v25  ;;  %s1836_s18 = sld [smem:[#allocation8 + $0x284]]  ;;  %s1838_s19 = sld [smem:[#allocation8 + $0x285]] }
  0x82   :  { %v1806_v12 = vmul.f32 %v583_v45, %v1429_v50  ;;  %v1809_v37 = vmul.f32 %v586_v16, %v1436_v0  ;;  %v601_v55 = vstv %s1692_s20  ;;  %v1817_v44 = vmul.f32 %v589_v27, %v1438_v54  ;;  %s1846_s1 = sld [smem:[#allocation8 + $0x286]]  ;;  %s1848_s3 = sld [smem:[#allocation8 + $0x287]] }
  0x83   :  { %v604_v21 = vstv %s1694_s21  ;;  %v607_v5 = vstv %s1702_s22  ;;  %v614_v36 = vstv %s1716_s24  ;;  %v1827_v16 = vmul.f32 %v592_v30, %v1451_v59  ;;  %s1860_s0 = sld [smem:[#allocation8 + $0x288]]  ;;  %s1862_s20 = sld [smem:[#allocation8 + $0x289]] }
  0x84   :  { %2370 = vst [vmem:[#allocation59_spill] sm:$0xff] %v1806_v12  ;;  %2371 = vst [vmem:[#allocation60_spill] sm:$0xff] %v1809_v37  ;;  %v1830_v45 = vmul.f32 %v595_v43, %v1453_v60  ;;  %v1833_v51 = vmul.f32 %v598_v26, %v1460_v63  ;;  %v618_v20 = vstv %s1718_s25  ;;  %v1841_v27 = vmul.f32 %v601_v55, %v1462_v2  ;;  %s1870_s21 = sld [smem:[#allocation8 + $0x28a]]  ;;  %s1872_s22 = sld [smem:[#allocation8 + $0x28b]] }
  0x85   :  { %2372 = vst [vmem:[#allocation61_spill] sm:$0xff] %v1817_v44  ;;  %2373 = vst [vmem:[#allocation62_spill] sm:$0xff] %v1827_v16  ;;  %v621_v30 = vstv %s1726_s5  ;;  %v624_v16 = vstv %s1728_s26  ;;  %v1851_v26 = vmul.f32 %v604_v21, %v1481_v9  ;;  %v1854_v43 = vmul.f32 %v607_v5, %v1492_v13  ;;  %s1882_s24 = sld [smem:[#allocation8 + $0x28c]]  ;;  %s1884_s25 = sld [smem:[#allocation8 + $0x28d]] }
  0x86   :  { %2374 = vst [vmem:[#allocation63_spill] sm:$0xff] %v1830_v45  ;;  %2375 = vst [vmem:[#allocation64_spill] sm:$0xff] %v1833_v51  ;;  %v1857_v51 = vmul.f32 %v614_v36, %v1370_v18  ;;  %v627_v55 = vstv %s1740_s27  ;;  %v1865_v35 = vmul.f32 %v618_v20, %v1372_v19  ;;  %v633_v21 = vstv %s1750_s29  ;;  %s1892_s5 = sld [smem:[#allocation8 + $0x300]]  ;;  %s1894_s26 = sld [smem:[#allocation8 + $0x301]] }
  0x87   :  { %2376 = vst [vmem:[#allocation65_spill] sm:$0xff] %v1841_v27  ;;  %2377 = vst [vmem:[#allocation66_spill] sm:$0xff] %v1851_v26  ;;  %v630_v27 = vstv %s1742_s28  ;;  %v636_v26 = vstv %s1752_s30  ;;  %v1875_v36 = vmul.f32 %v621_v30, %v1378_v22  ;;  %v1878_v5 = vmul.f32 %v624_v16, %v1380_v23  ;;  %s1906_s27 = sld [smem:[#allocation8 + $0x302]]  ;;  %s1908_s28 = sld [smem:[#allocation8 + $0x303]] }
  0x88   :  { %2378 = vst [vmem:[#allocation67_spill] sm:$0xff] %v1854_v43  ;;  %v639_v43 = vstv %s1764_s8  ;;  %v642_v45 = vstv %s1766_s9  ;;  %v1887_v20 = vmul.f32 %v627_v55, %v1382_v24  ;;  %v645_v44 = vstv %s1774_s2  ;;  %s1918_s29 = sld [smem:[#allocation8 + $0x304]]  ;;  %s1920_s30 = sld [smem:[#allocation8 + $0x305]] }
  0x89   :  { %v648_v46 = vstv %s1776_s4  ;;  %v651_v8 = vstv %s1788_s10  ;;  %v1897_v16 = vmul.f32 %v630_v27, %v1384_v25  ;;  %v1900_v30 = vmul.f32 %v633_v21, %v1429_v50  ;;  %s1932_s8 = sld [smem:[#allocation8 + $0x306]]  ;;  %s1934_s9 = sld [smem:[#allocation8 + $0x307]] }
  0x8a   :  { %v1903_v31 = vmul.f32 %v636_v26, %v1436_v0  ;;  %v654_v37 = vstv %s1790_s11  ;;  %v1911_v55 = vmul.f32 %v639_v43, %v1438_v54  ;;  %v1914_v27 = vmul.f32 %v642_v45, %v1451_v59  ;;  %s1942_s2 = sld [smem:[#allocation8 + $0x308]]  ;;  %s1952_s4 = sld [smem:[#allocation8 + $0x309]] }
  0x8b   :  { %2379 = vst [vmem:[#allocation68_spill] sm:$0xff] %v1897_v16  ;;  %2380 = vst [vmem:[#allocation69_spill] sm:$0xff] %v1900_v30  ;;  %v657_v38 = vstv %s1798_s12  ;;  %v664_v21 = vstv %s1812_s14  ;;  %v1923_v26 = vmul.f32 %v645_v44, %v1453_v60  ;;  %v1929_v43 = vmul.f32 %v651_v8, %v1462_v2  ;;  %s1954_s10 = sld [smem:[#allocation8 + $0x30a]]  ;;  %s1970_s11 = sld [smem:[#allocation8 + $0x30b]] }
  0x8c   :  { %2381 = vst [vmem:[#allocation70_spill] sm:$0xff] %v1903_v31  ;;  %2382 = vst [vmem:[#allocation71_spill] sm:$0xff] %v1911_v55  ;;  %v1926_v31 = vmul.f32 %v648_v46, %v1460_v63  ;;  %v668_v44 = vstv %s1814_s15  ;;  %v674_v46 = vstv %s1824_s17  ;;  %v1945_v8 = vmul.f32 %v657_v38, %v1492_v13  ;;  %s1972_s12 = sld [smem:[#allocation8 + $0x30c]]  ;;  %s1982_s14 = sld [smem:[#allocation8 + $0x380]] }
  0x8d   :  { %2383 = vst [vmem:[#allocation72_spill] sm:$0xff] %v1914_v27  ;;  %2384 = vst [vmem:[#allocation73_spill] sm:$0xff] %v1923_v26  ;;  %v1937_v27 = vmul.f32 %v654_v37, %v1481_v9  ;;  %v671_v26 = vstv %s1822_s16  ;;  %v1948_v45 = vmul.f32 %v664_v21, %v1370_v18  ;;  %v683_v37 = vstv %s1846_s1  ;;  %s2002_s15 = sld [smem:[#allocation9]]  ;;  %s2004_s16 = sld [smem:[#allocation9 + $0x1]] }
  0x8e   :  { %2385 = vst [vmem:[#allocation74_spill] sm:$0xff] %v1926_v31  ;;  %2386 = vst [vmem:[#allocation75_spill] sm:$0xff] %v1929_v43  ;;  %v677_v43 = vstv %s1836_s18  ;;  %v680_v31 = vstv %s1838_s19  ;;  %v689_v55 = vstv %s1860_s0  ;;  %v692_v30 = vstv %s1862_s20  ;;  %s2014_s17 = sld [smem:[#allocation9 + $0x2]]  ;;  %s2016_s18 = sld [smem:[#allocation9 + $0x3]] }
  0x8f   :  { %2387 = vst [vmem:[#allocation76_spill] sm:$0xff] %v1937_v27  ;;  %2388 = vst [vmem:[#allocation77_spill] sm:$0xff] %v1945_v8  ;;  %v686_v27 = vstv %s1848_s3  ;;  %v1961_v4 = vmul.f32 %v668_v44, %v1372_v19  ;;  %v1964_v38 = vmul.f32 %v671_v26, %v1378_v22  ;;  %v1967_v21 = vmul.f32 %v674_v46, %v1380_v23  ;;  %s2022_s19 = sld [smem:[#allocation9 + $0x4]]  ;;  %s2024_s1 = sld [smem:[#allocation9 + $0x5]] }
  0x90   :  { %v695_v8 = vstv %s1870_s21  ;;  %v1975_v13 = vmul.f32 %v677_v43, %v1382_v24  ;;  %v1978_v44 = vmul.f32 %v680_v31, %v1384_v25  ;;  %v698_v29 = vstv %s1872_s22  ;;  %s2032_s3 = sld [smem:[#allocation9 + $0x6]]  ;;  %s2060_s0 = sld [smem:[#allocation9 + $0x7]] }
  0x91   :  { %v701_v26 = vstv %s1882_s24  ;;  %v1985_v46 = vmul.f32 %v683_v37, %v1429_v50  ;;  %v1988_v12 = vmul.f32 %v686_v27, %v1436_v0  ;;  %v1991_v43 = vmul.f32 %v689_v55, %v1438_v54  ;;  %s2080_s20 = sld [smem:[#allocation8 + $0x381]]  ;;  %s2106_s21 = sld [smem:[#allocation8 + $0x382]] }
  0x92   :  { %2389 = vst [vmem:[#allocation78_spill] sm:$0xff] %v1978_v44  ;;  %v1994_v31 = vmul.f32 %v692_v30, %v1451_v59  ;;  %v1997_v34 = vmul.f32 %v695_v8, %v1453_v60  ;;  %v704_v44 = vstv %s1884_s25  ;;  %v714_v16 = vstv %s1892_s5  ;;  %s2130_s22 = sld [smem:[#allocation8 + $0x383]]  ;;  %s2147_s24 = sld [smem:[#allocation8 + $0x28e]] }
  0x93   :  { %2390 = vst [vmem:[#allocation79_spill] sm:$0xff] %v1985_v46  ;;  %2391 = vst [vmem:[#allocation80_spill] sm:$0xff] %v1988_v12  ;;  %v718_v37 = vstv %s1894_s26  ;;  %v2007_v27 = vmul.f32 %v698_v29, %v1460_v63  ;;  %v2010_v55 = vmul.f32 %v701_v26, %v1462_v2  ;;  %v721_v30 = vstv %s1906_s27  ;;  %s2149_s25 = sld [smem:[#allocation8 + $0x28f]]  ;;  %s2155_s5 = sld [smem:[#allocation8 + $0x30d]] }
  0x94   :  { %2392 = vst [vmem:[#allocation81_spill] sm:$0xff] %v1991_v43  ;;  %2393 = vst [vmem:[#allocation82_spill] sm:$0xff] %v1994_v31  ;;  %v724_v31 = vstv %s1908_s28  ;;  %v727_v8 = vstv %s1918_s29  ;;  %v733_v43 = vstv %s1932_s8  ;;  %v736_v12 = vstv %s1934_s9  ;;  %s2161_s26 = sld [smem:[#allocation8 + $0x384]]  ;;  %s2174_s27 = sld [smem:[#allocation8 + $0x30e]] }
  0x95   :  { %2394 = vst [vmem:[#allocation83_spill] sm:$0xff] %v1997_v34  ;;  %2395 = vst [vmem:[#allocation84_spill] sm:$0xff] %v2007_v27  ;;  %v730_v34 = vstv %s1920_s30  ;;  %v2027_v29 = vmul.f32 %v704_v44, %v1481_v9  ;;  %v715_v26 = vmul.f32 %v714_v16, %v1370_v18  ;;  %v719_v2 = vmul.f32 %v718_v37, %v1372_v19  ;;  %s2180_s28 = sld [smem:[#allocation8 + $0x30f]]  ;;  %s2186_s29 = sld [smem:[#allocation8 + $0x385]] }
  0x96   :  { %2396 = vst [vmem:[#allocation85_spill] sm:$0xff] %v2010_v55  ;;  %v739_v55 = vstv %s1942_s2  ;;  %v722_v27 = vmul.f32 %v721_v30, %v1378_v22  ;;  %v2036_v46 = vmul.f32 %v724_v31, %v1380_v23  ;;  %v742_v3 = vstv %s1952_s4  ;;  %s2188_s30 = sld [smem:[#allocation8 + $0x386]]  ;;  %s2194_s8 = sld [smem:[#allocation8 + $0x387]] }
  0x97   :  { %2397 = vst [vmem:[#allocation86_spill] sm:$0xff] %v2027_v29  ;;  %v745_v28 = vstv %s1954_s10  ;;  %v2041_v44 = vmul.f32 %v727_v8, %v1382_v24  ;;  %v2044_v16 = vmul.f32 %v730_v34, %v1384_v25  ;;  %v2047_v37 = vmul.f32 %v733_v43, %v1429_v50  ;;  %s2200_s9 = sld [smem:[#allocation8 + $0x388]]  ;;  %s2211_s2 = sld [smem:[#allocation8 + $0x389]] }
  0x98   :  { %v2050_v9 = vmul.f32 %v736_v12, %v1436_v0  ;;  %v2053_v31 = vmul.f32 %v739_v55, %v1438_v54  ;;  %v2056_v30 = vmul.f32 %v742_v3, %v1451_v59  ;;  %v748_v8 = vstv %s1970_s11  ;;  %s2213_s4 = sld [smem:[#allocation8 + $0x38a]]  ;;  %s2227_s10 = sld [smem:[#allocation11]] }
  0x99   :  { %v416_v34 = vstv %s2002_s15  ;;  %v466_v25 = vstv %s2004_s16  ;;  %v2065_v43 = vmul.f32 %v745_v28, %v1453_v60  ;;  %v764_v50 = vstv %s1982_s14  ;;  %s2234_s11 = sld [smem:[#allocation11 + $0x1]]  ;;  %s2249_s14 = sld [smem:[#allocation8 + $0x38c]] }
  0x9a   :  { %2398 = vst [vmem:[#allocation87_spill] sm:$0xff] %v2056_v30  ;;  %v417_v12 = vadd.f32 %v416_v34, %v1471_v6  ;;  %v467_v55 = vadd.f32 %v466_v25, %v1577_v47  ;;  %v516_v54 = vstv %s2014_s17  ;;  %v566_v0 = vstv %s2016_s18  ;;  %s2251_s15 = sld [smem:[#allocation11 + $0x4]]  ;;  %s2257_s16 = sld [smem:[#allocation8 + $0x38d]] }
  0x9b   :  { %v517_v3 = vadd.f32 %v516_v54, %v1673_v48  ;;  %v567_v59 = vadd.f32 %v566_v0, %v1769_v42  ;;  %v616_v24 = vstv %s2022_s19  ;;  %v666_v29 = vstv %s2024_s1  ;;  %s2262_s17 = sld [smem:[#allocation8 + $0x38e]]  ;;  %s2264_s18 = sld [smem:[#allocation11 + $0x5]] }
  0x9c   :  { %v420_v23 = vadd.f32 %v1474_v7, %v417_v12  ;;  %v470_v30 = vadd.f32 %v1587_v52, %v467_v55  ;;  %v617_v28 = vadd.f32 %v616_v24, %v1857_v51  ;;  %v667_v60 = vadd.f32 %v666_v29, %v1948_v45 }
  0x9d   :  { %v520_v25 = vadd.f32 %v1683_v57, %v517_v3  ;;  %v570_v6 = vadd.f32 %v1779_v41, %v567_v59  ;;  %v716_v47 = vstv %s2032_s3  ;;  %v2086_v54 = vmul.f32 %v748_v8, %v1460_v63  ;;  %s2272_s3 = sld [smem:[#allocation8 + $0x38f]] }
  0x9e   :  { %v423_v0 = vadd.f32 %v1484_v10, %v420_v23  ;;  %v473_v7 = vadd.f32 %v1590_v53, %v470_v30  ;;  %v620_v52 = vadd.f32 %v1865_v35, %v617_v28  ;;  %v670_v24 = vadd.f32 %v1961_v4, %v667_v60  ;;  %v2407_v28 = vld [vmem:[#allocation69_spill] sm:$0xff] }
  0x9f   :  { %v523_v48 = vadd.f32 %v1686_v58, %v520_v25  ;;  %v573_v51 = vadd.f32 %v1782_v49, %v570_v6  ;;  %v717_v57 = vadd.f32 %v716_v47, %v715_v26  ;;  %v765_v59 = vmul.f32 %v764_v50, %v1370_v18  ;;  %v2401_v26 = vld [vmem:[#allocation68_spill] sm:$0xff]  ;;  %v2408_v6 = vld [vmem:[#allocation79_spill] sm:$0xff] }
  0xa0   :  { %v426_v42 = vadd.f32 %v1495_v14, %v423_v0  ;;  %v476_v41 = vadd.f32 %v1593_v1, %v473_v7  ;;  %v623_v45 = vadd.f32 %v1875_v36, %v620_v52  ;;  %v673_v23 = vadd.f32 %v1964_v38, %v670_v24  ;;  %v2409_v0 = vld [vmem:[#allocation50_spill] sm:$0xff]  ;;  %v2410_v52 = vld [vmem:[#allocation60_spill] sm:$0xff] }
  0xa1   :  { %v526_v10 = vadd.f32 %v1689_v61, %v523_v48  ;;  %v576_v35 = vadd.f32 %v1785_v39, %v573_v51  ;;  %v720_v60 = vadd.f32 %v719_v2, %v717_v57  ;;  %v766_v53 = vstv %s2060_s0  ;;  %v2411_v51 = vld [vmem:[#allocation31_spill] sm:$0xff]  ;;  %v2412_v57 = vld [vmem:[#allocation41_spill] sm:$0xff]  ;;  %s1050_s0 = sld [smem:[#allocation11 + $0x7]] }
  0xa2   :  { %v429_v4 = vadd.f32 %v1498_v15, %v426_v42  ;;  %v479_v58 = vadd.f32 %v1601_v56, %v476_v41  ;;  %v626_v18 = vadd.f32 %v1878_v5, %v623_v45  ;;  %v676_v50 = vadd.f32 %v1967_v21, %v673_v23  ;;  %v2413_v42 = vld [vmem:[#allocation70_spill] sm:$0xff]  ;;  %v2414_v45 = vld [vmem:[#allocation80_spill] sm:$0xff] }
  0xa3   :  { %v529_v14 = vadd.f32 %v1697_v11, %v526_v10  ;;  %v579_v1 = vadd.f32 %v1793_v40, %v576_v35  ;;  %v723_v61 = vadd.f32 %v722_v27, %v720_v60  ;;  %v767_v49 = vadd.f32 %v766_v53, %v765_v59  ;;  %v2399_v11 = vld [vmem:[#allocation29_spill] sm:$0xff]  ;;  %v2400_v40 = vld [vmem:[#allocation39_spill] sm:$0xff] }
  0xa4   :  { %v432_v2 = vadd.f32 %v1506_v17, %v429_v4  ;;  %v482_v39 = vadd.f32 %v1611_v62, %v479_v58  ;;  %v629_v15 = vadd.f32 %v1887_v20, %v626_v18  ;;  %v679_v56 = vadd.f32 %v1975_v13, %v676_v50  ;;  %v2402_v17 = vld [vmem:[#allocation78_spill] sm:$0xff]  ;;  %v2403_v62 = vld [vmem:[#allocation49_spill] sm:$0xff]  ;;  %v2404_v20 = vld [vmem:[#allocation59_spill] sm:$0xff] }
  0xa5   :  { %v532_v36 = vadd.f32 %v1707_v33, %v529_v14  ;;  %v582_v5 = vadd.f32 %v1803_v32, %v579_v1  ;;  %v726_v38 = vadd.f32 %v2036_v46, %v723_v61  ;;  %v768_v21 = vstv %s2080_s20  ;;  %v2405_v32 = vld [vmem:[#allocation30_spill] sm:$0xff]  ;;  %v2406_v46 = vld [vmem:[#allocation40_spill] sm:$0xff]  ;;  %v2415_v10 = vld [vmem:[#allocation51_spill] sm:$0xff]  ;;  %s1161_s20 = smov [#allocation12]  }
  0xa6   :  { %v435_v29 = vadd.f32 %v2399_v11, %v432_v2  ;;  %v485_v27 = vadd.f32 %v2400_v40, %v482_v39  ;;  %v632_v30 = vadd.f32 %v2401_v26, %v629_v15  ;;  %v682_v8 = vadd.f32 %v2402_v17, %v679_v56  ;;  %v2416_v60 = vld [vmem:[#allocation61_spill] sm:$0xff]  ;;  %v2417_v18 = vld [vmem:[#allocation32_spill] sm:$0xff]  ;;  %v2418_v14 = vld [vmem:[#allocation42_spill] sm:$0xff] }
  0xa7   :  { %v535_v34 = vadd.f32 %v2403_v62, %v532_v36  ;;  %v585_v12 = vadd.f32 %v2404_v20, %v582_v5  ;;  %v729_v13 = vadd.f32 %v2041_v44, %v726_v38  ;;  %v769_v33 = vmul.f32 %v768_v21, %v1372_v19  ;;  %v2419_v1 = vld [vmem:[#allocation71_spill] sm:$0xff]  ;;  %v2421_v39 = vld [vmem:[#allocation52_spill] sm:$0xff]  ;;  %v2422_v56 = vld [vmem:[#allocation62_spill] sm:$0xff] }
  0xa8   :  { %v438_v55 = vadd.f32 %v2405_v32, %v435_v29  ;;  %v488_v3 = vadd.f32 %v2406_v46, %v485_v27  ;;  %v635_v25 = vadd.f32 %v2407_v28, %v632_v30  ;;  %v685_v47 = vadd.f32 %v2408_v6, %v682_v8  ;;  %v2423_v38 = vld [vmem:[#allocation33_spill] sm:$0xff]  ;;  %v2424_v11 = vld [vmem:[#allocation43_spill] sm:$0xff]  ;;  %v2425_v40 = vld [vmem:[#allocation72_spill] sm:$0xff] }
  0xa9   :  { %v538_v7 = vadd.f32 %v2409_v0, %v535_v34  ;;  %v588_v24 = vadd.f32 %v2410_v52, %v585_v12  ;;  %v732_v48 = vadd.f32 %v2044_v16, %v729_v13  ;;  %v770_v44 = vadd.f32 %v769_v33, %v767_v49  ;;  %v2420_v49 = vld [vmem:[#allocation81_spill] sm:$0xff]  ;;  %v2426_v26 = vld [vmem:[#allocation82_spill] sm:$0xff]  ;;  %v2428_v62 = vld [vmem:[#allocation63_spill] sm:$0xff] }
  0xaa   :  { %v441_v19 = vadd.f32 %v2411_v51, %v438_v55  ;;  %v491_v59 = vadd.f32 %v2412_v57, %v488_v3  ;;  %v638_v41 = vadd.f32 %v2413_v42, %v635_v25  ;;  %v688_v23 = vadd.f32 %v2414_v45, %v685_v47  ;;  %v2427_v17 = vld [vmem:[#allocation53_spill] sm:$0xff]  ;;  %v2429_v20 = vld [vmem:[#allocation34_spill] sm:$0xff]  ;;  %v2430_v13 = vld [vmem:[#allocation44_spill] sm:$0xff] }
  0xab   :  { %v541_v35 = vadd.f32 %v2415_v10, %v538_v7  ;;  %v591_v53 = vadd.f32 %v2416_v60, %v588_v24  ;;  %v735_v4 = vadd.f32 %v2047_v37, %v732_v48  ;;  %v771_v58 = vstv %s2106_s21  ;;  %v2431_v32 = vld [vmem:[#allocation73_spill] sm:$0xff]  ;;  %v2432_v46 = vld [vmem:[#allocation83_spill] sm:$0xff]  ;;  %v2433_v28 = vld [vmem:[#allocation54_spill] sm:$0xff]  ;;  %s852_s21 = sshll.u32 %s1161_s20, 4  ;;  %s853_s21 = int_to_ptr.vmem [resolvable:$true] %s852_s21 }
  0xac   :  { %v444_v50 = vadd.f32 %v2417_v18, %v441_v19  ;;  %v494_v16 = vadd.f32 %v2418_v14, %v491_v59  ;;  %v641_v61 = vadd.f32 %v2419_v1, %v638_v41  ;;  %v691_v2 = vadd.f32 %v2420_v49, %v688_v23  ;;  %v2434_v6 = vld [vmem:[#allocation64_spill] sm:$0xff]  ;;  %v2435_v0 = vld [vmem:[#allocation87_spill] sm:$0xff]  ;;  %v2437_v48 = vld [vmem:[#allocation45_spill] sm:$0xff]  ;;  %p1129_p12 = scmp.lt.s32.totalorder %s853_s21, %s853_s21 }
  0xad   :  { %v544_v15 = vadd.f32 %v2421_v39, %v541_v35  ;;  %v594_v36 = vadd.f32 %v2422_v56, %v591_v53  ;;  %v738_v5 = vadd.f32 %v2050_v9, %v735_v4  ;;  %v772_v37 = vmul.f32 %v771_v58, %v1378_v22  ;;  %v2436_v24 = vld [vmem:[#allocation35_spill] sm:$0xff]  ;;  %v2438_v51 = vld [vmem:[#allocation74_spill] sm:$0xff]  ;;  %v2439_v57 = vld [vmem:[#allocation84_spill] sm:$0xff] }
  0xae   :  { %v447_v21 = vadd.f32 %v2423_v38, %v444_v50  ;;  %v497_v29 = vadd.f32 %v2424_v11, %v494_v16  ;;  %v644_v27 = vadd.f32 %v2425_v40, %v641_v61  ;;  %v694_v30 = vadd.f32 %v2426_v26, %v691_v2  ;;  %v2440_v42 = vld [vmem:[#allocation55_spill] sm:$0xff]  ;;  %v2441_v45 = vld [vmem:[#allocation65_spill] sm:$0xff]  ;;  %v2443_v53 = vld [vmem:[#allocation36_spill] sm:$0xff] }
  0xaf   :  { %v547_v8 = vadd.f32 %v2427_v17, %v544_v15  ;;  %v597_v34 = vadd.f32 %v2428_v62, %v594_v36  ;;  %v741_v9 = vadd.f32 %v2053_v31, %v738_v5  ;;  %v773_v22 = vadd.f32 %v772_v37, %v770_v44  ;;  %v2442_v35 = vld [vmem:[#allocation17_spill] sm:$0xff]  ;;  %v2444_v58 = vld [vmem:[#allocation46_spill] sm:$0xff]  ;;  %v2445_v50 = vld [vmem:[#allocation75_spill] sm:$0xff] }
  0xb0   :  { %v450_v12 = vadd.f32 %v2429_v20, %v447_v21  ;;  %v500_v33 = vadd.f32 %v2430_v13, %v497_v29  ;;  %v647_v55 = vadd.f32 %v2431_v32, %v644_v27  ;;  %v697_v3 = vadd.f32 %v2432_v46, %v694_v30  ;;  %v2446_v16 = vld [vmem:[#allocation85_spill] sm:$0xff]  ;;  %v2448_v49 = vld [vmem:[#allocation66_spill] sm:$0xff]  ;;  %v2449_v56 = vld [vmem:[#allocation76_spill] sm:$0xff] }
  0xb1   :  { %v550_v25 = vadd.f32 %v2433_v28, %v547_v8  ;;  %v600_v47 = vadd.f32 %v2434_v6, %v597_v34  ;;  %v744_v7 = vadd.f32 %v2435_v0, %v741_v9  ;;  %v774_v52 = vstv %s2130_s22  ;;  %v2450_v37 = vld [vmem:[#allocation25_spill] sm:$0xff]  ;;  %v2453_v27 = vld [vmem:[#allocation47_spill] sm:$0xff]  ;;  %v2455_v34 = vld [vmem:[#allocation28_spill] sm:$0xff]  ;;  %s1124_s22 = scalar_lea.vmem %s853_s21, 128 }
  0xb2   :  { %v453_v31 = vadd.f32 %v2436_v24, %v450_v12  ;;  %v503_v44 = vadd.f32 %v2437_v48, %v500_v33  ;;  %v650_v19 = vadd.f32 %v2438_v51, %v647_v55  ;;  %v700_v59 = vadd.f32 %v2439_v57, %v697_v3  ;;  %v2452_v29 = vld [vmem:[#allocation37_spill] sm:$0xff]  ;;  %v2457_v20 = vld [vmem:[#allocation86_spill] sm:$0xff]  ;;  %v2458_v13 = vld [vmem:[#allocation27_spill] sm:$0xff]  ;;  %p1125_p11 = scmp.ne.s32.totalorder %s853_s21, %s1124_s22  ;;  %p1130_p13 = scmp.lt.s32.totalorder %s1124_s22, %s1124_s22 }
  0xb3   :  { %v553_v41 = vadd.f32 %v2440_v42, %v550_v25  ;;  %v603_v23 = vadd.f32 %v2441_v45, %v600_v47  ;;  %v747_v10 = vadd.f32 %v2065_v43, %v744_v7  ;;  %v775_v60 = vmul.f32 %v774_v52, %v2442_v35  ;;  %v2447_v43 = vld [vmem:[#allocation56_spill] sm:$0xff]  ;;  %v2454_v8 = vld [vmem:[#allocation57_spill] sm:$0xff]  ;;  %v2459_v32 = vld [vmem:[#allocation67_spill] sm:$0xff] }
  0xb4   :  { %v456_v4 = vadd.f32 %v2443_v53, %v453_v31  ;;  %v506_v18 = vadd.f32 %v2444_v58, %v503_v44  ;;  %v653_v14 = vadd.f32 %v2445_v50, %v650_v19  ;;  %v703_v1 = vadd.f32 %v2446_v16, %v700_v59  ;;  %v2461_v28 = vld [vmem:[#allocation18_spill] sm:$0xff]  ;;  %v2462_v6 = vld [vmem:[#allocation77_spill] sm:$0xff]  ;;  %v2465_v44 = vld [vmem:[#allocation48_spill] sm:$0xff]  ;;  %p1131_p0 = por %p1130_p13, %p1129_p12 }
  0xb5   :  { %v556_v61 = vadd.f32 %v2447_v43, %v553_v41  ;;  %v606_v2 = vadd.f32 %v2448_v49, %v603_v23  ;;  %v707_v39 = vstv %s2147_s24  ;;  %v710_v15 = vstv %s2149_s25  ;;  %v2463_v7 = vld [vmem:[#allocation26_spill] sm:$0xff]  ;;  %v2467_v35 = vld [vmem:[#allocation19_spill] sm:$0xff]  ;;  %v2468_v53 = vld [vmem:[#allocation20_spill] sm:$0xff] }
  0xb6   :  { %v656_v36 = vadd.f32 %v2449_v56, %v653_v14  ;;  %v750_v5 = vadd.f32 %v2086_v54, %v747_v10  ;;  %v2451_v38 = vstv %s1972_s12  ;;  %v754_v11 = vstv %s2155_s5  ;;  %v2464_v31 = vld [vmem:[#allocation38_spill] sm:$0xff]  ;;  %s2241_s12 = sld [smem:[#allocation11 + $0x3]]  ;;  %v2469_v49 = vld [vmem:[#allocation21_spill] sm:$0xff]  ;;  %p1132_p1 = pnand %p1131_p0, %p1125_p11 }
  0xb7   :  { %v752_v21 = vmul.f32 %v2451_v38, %v2450_v37  ;;  %v459_v40 = vadd.f32 %v2452_v29, %v456_v4  ;;  %v509_v26 = vadd.f32 %v2453_v27, %v506_v18  ;;  %v776_v30 = vadd.f32 %v775_v60, %v773_v22  ;;  %v2466_v59 = vld [vmem:[#allocation58_spill] sm:$0xff] }
  0xb8   :  { %v777_v17 = vstv %s2161_s26  ;;  %v559_v62 = vadd.f32 %v2454_v8, %v556_v61  ;;  %v2456_v9 = vstv %s1704_s23  ;;  %v706_v12 = vadd.f32 %v2457_v20, %v703_v1  ;;  %s2232_s23 = sld [smem:[#allocation8 + $0x38b]]  ;;  %v2471_v8 = vld [vmem:[#allocation23_spill] sm:$0xff] }
  0xb9   :  { %v611_v54 = vmul.f32 %v2456_v9, %v2455_v34  ;;  %v708_v33 = vmul.f32 %v707_v39, %v2458_v13  ;;  %v609_v55 = vadd.f32 %v2459_v32, %v606_v2  ;;  %v2460_v22 = vstv %s1800_s13  ;;  %s2239_s13 = sld [smem:[#allocation11 + $0x2]]  ;;  %v2472_v9 = vld [vmem:[#allocation24_spill] sm:$0xff] }
  0xba   :  { %v661_v46 = vmul.f32 %v2460_v22, %v2455_v34  ;;  %v711_v3 = vmul.f32 %v710_v15, %v2455_v34  ;;  %v778_v25 = vmul.f32 %v777_v17, %v2461_v28  ;;  %v659_v47 = vadd.f32 %v2462_v6, %v656_v36 }
  0xbb   :  { %v753_v0 = vadd.f32 %v752_v21, %v750_v5  ;;  %v755_v52 = vmul.f32 %v754_v11, %v2463_v7  ;;  %v757_v24 = vstv %s2174_s27  ;;  %v462_v48 = vadd.f32 %v2464_v31, %v459_v40  ;;  %v2470_v11 = vld [vmem:[#allocation22_spill] sm:$0xff] }
  0xbc   :  { %v512_v51 = vadd.f32 %v2465_v44, %v509_v26  ;;  %v760_v19 = vstv %s2180_s28  ;;  %v779_v57 = vadd.f32 %v778_v25, %v776_v30  ;;  %v562_v42 = vadd.f32 %v2466_v59, %v559_v62 }
  0xbd   :  { %v709_v41 = vadd.f32 %v708_v33, %v706_v12  ;;  %v780_v45 = vstv %s2186_s29  ;;  %v783_v23 = vstv %s2188_s30  ;;  %v612_v10 = vadd.f32 %v611_v54, %v609_v55 }
  0xbe   :  { %v781_v60 = vmul.f32 %v780_v45, %v2467_v35  ;;  %v784_v4 = vmul.f32 %v783_v23, %v2468_v53  ;;  %v786_v58 = vstv %s2194_s8  ;;  %v662_v18 = vadd.f32 %v661_v46, %v659_v47 }
  0xbf   :  { %v756_v50 = vadd.f32 %v755_v52, %v753_v0  ;;  %v758_v14 = vmul.f32 %v757_v24, %v2458_v13  ;;  %v789_v16 = vstv %s2200_s9  ;;  %v463_v1 = vmax.f32 %v462_v48, 0.0 }
  0xc0   :  { %v761_v43 = vmul.f32 %v760_v19, %v2455_v34  ;;  %v782_v61 = vadd.f32 %v781_v60, %v779_v57  ;;  %v787_v2 = vmul.f32 %v786_v58, %v2469_v49  ;;  %v513_v39 = vmax.f32 %v512_v51, 0.0 }
  0xc1   :  { %v712_v15 = vadd.f32 %v711_v3, %v709_v41  ;;  %v792_v56 = vstv %s2211_s2  ;;  %v795_v36 = vstv %s2213_s4  ;;  %v563_v5 = vmax.f32 %v562_v42, 0.0 }
  0xc2   :  { %v613_v38 = vmax.f32 %v612_v10, 0.0  ;;  %v785_v21 = vadd.f32 %v784_v4, %v782_v61  ;;  %v790_v29 = vmul.f32 %v789_v16, %v2470_v11  ;;  %v663_v40 = vmax.f32 %v662_v18, 0.0 }
  0xc3   :  { %v759_v27 = vadd.f32 %v758_v14, %v756_v50  ;;  %v814_v26 = vstv %s2227_s10  ;;  %v816_v30 = vstv %s2310_s6  ;;  %v793_v62 = vmul.f32 %v792_v56, %v2471_v8  ;;  %s2278_s6 = sld [smem:[#allocation11 + $0x6]] }
  0xc4   :  { %v788_v17 = vadd.f32 %v787_v2, %v785_v21  ;;  %v796_v54 = vmul.f32 %v795_v36, %v2472_v9  ;;  %v815_v20 = vmul.f32 %v814_v26, %v463_v1  ;;  %v798_v12 = vstv %s2232_s23 }
  0xc5   :  { %v818_v33 = vstv %s2234_s11  ;;  %v821_v32 = vstv %s2239_s13  ;;  %v824_v55 = vstv %s2241_s12  ;;  %v801_v25 = vstv %s2249_s14 }
  0xc6   :  { %v791_v22 = vadd.f32 %v790_v29, %v788_v17  ;;  %v817_v46 = vadd.f32 %v816_v30, %v815_v20  ;;  %v819_v3 = vmul.f32 %v818_v33, %v513_v39  ;;  %v822_v28 = vmul.f32 %v821_v32, %v563_v5 }
  0xc7   :  { %v827_v6 = vstv %s2251_s15  ;;  %v799_v0 = vmul.f32 %v798_v12, %v1460_v63  ;;  %v825_v24 = vmul.f32 %v824_v55, %v613_v38  ;;  %v713_v31 = vmax.f32 %v712_v15, 0.0 }
  0xc8   :  { %v794_v47 = vadd.f32 %v793_v62, %v791_v22  ;;  %v820_v52 = vadd.f32 %v819_v3, %v817_v46  ;;  %v762_v48 = vadd.f32 %v761_v43, %v759_v27  ;;  %v804_v44 = vstv %s2257_s16 }
  0xc9   :  { %v802_v19 = vmul.f32 %v801_v25, %v2450_v37  ;;  %v828_v59 = vmul.f32 %v827_v6, %v663_v40  ;;  %v807_v42 = vstv %s2262_s17  ;;  %v830_v41 = vstv %s2264_s18 }
  0xca   :  { %v797_v51 = vadd.f32 %v796_v54, %v794_v47  ;;  %v823_v57 = vadd.f32 %v822_v28, %v820_v52  ;;  %v805_v23 = vmul.f32 %v804_v44, %v2463_v7  ;;  %v763_v63 = vmax.f32 %v762_v48, 0.0 }
  0xcb   :  { %v810_v35 = vstv %s2272_s3  ;;  %v808_v53 = vmul.f32 %v807_v42, %v2458_v13  ;;  %v831_v58 = vmul.f32 %v830_v41, %v713_v31  ;;  %v833_v18 = vstv %s2278_s6 }
  0xcc   :  { %v800_v45 = vadd.f32 %v799_v0, %v797_v51  ;;  %v826_v10 = vadd.f32 %v825_v24, %v823_v57  ;;  %v811_v37 = vmul.f32 %v810_v35, %v2455_v34  ;;  %v834_v1 = vmul.f32 %v833_v18, %v763_v63 }
  0xcd   :  { %v836_v61 = vstv %s1050_s0 }
  0xce   :  { %v803_v60 = vadd.f32 %v802_v19, %v800_v45  ;;  %v829_v4 = vadd.f32 %v828_v59, %v826_v10 }
  0xd0   :  { %v806_v50 = vadd.f32 %v805_v23, %v803_v60  ;;  %v832_v16 = vadd.f32 %v831_v58, %v829_v4 }
  0xd2   :  { %v809_v14 = vadd.f32 %v808_v53, %v806_v50  ;;  %v835_v7 = vadd.f32 %v834_v1, %v832_v16 }
  0xd4   :  { %v812_v43 = vadd.f32 %v811_v37, %v809_v14 }
  0xd6   :  { %v813_v49 = vmax.f32 %v812_v43, 0.0 }
  0xd8   :  { %v837_v2 = vmul.f32 %v836_v61, %v813_v49 }
  0xda   :  { %v838_v39 = vadd.f32 %v837_v2, %v835_v7 }
  0xdc   :  { %v839_v15 = vmax.f32 %v838_v39, -30.0 }
  0xde   :  { %v840_v56 = vsub.f32 0.0, %v839_v15 }
  0xe0   :  { %v841_v36 = vmul.f32 1.442695, %v840_v56 }
  0xe2   :  { %1060 = vpow2.f32 %v841_v36 }
  0xec   :  { %v1061_v13 = vpop.eup %1060 }
  0xed   :  { %v843_v5 = vadd.f32 1.0, %v1061_v13 }
  0xef   :  { %1062 = vrcp.f32 %v843_v5 }
  0xf9   :  { %v1063_v34 = vpop.eup %1062 }
  0xfa   :  { %845 = vst [vmem:[#allocation12] sm:$0xff] %v1063_v34 }
  0xfb   :  { %1135 = shalt.err (!%p1132_p1)
}
  0xfc   :  { %s1136_s5 = scalar_lea.hbm %s2311_s7, 128 }
  0xfd   :  { %p1137_p2 = scmp.ne.s32.totalorder %s2311_s7, %s1136_s5  ;;  %p1140_p3 = scmp.lt.u32.totalorder %s1136_s5, %s2311_s7 }
  0xff   :  { %p1142_p4 = pnand %p1140_p3, %p1137_p2 }
 0x101   :  { %1145 = shalt.err (!%p1142_p4)
}
 0x102   :  { %855 = dma.vmem_to_hbm [thread:$0]  %s853_s21, 128, %s2311_s7, [#allocation4]  }
 0x103   :  { %1152 = dma.done.wait [#allocation4], 128  }
 0x104   :  { %1153 = vsyncadd [#allocation4], 4294967168 }
 0x105   :  { %859 = vsyncpa [#allocation4], 1 }
 0x106   :  { %860 = vsyncpa [#allocation5], 1 }
 0x107   :  { %861 = vsyncpa [#allocation7], 1 }
 0x108   :  { %862 = vsyncpa [#allocation10], 1 }

</bundles_post_ra>
